<compile_context>
chip_gen: v5e
topology: v5e:2x2
jax: 0.10.0
libtpu: 0.0.40
codegen_flags: <defaults>
</compile_context>

<pallas_src>
import math

import jax
import jax.numpy as jnp
from jax.experimental import pallas as pl
from jax.experimental.pallas import tpu as pltpu

# ----------------------------- config (small) --------------------------------
HIDDEN = 128
PATCH = 2
OUT_CH = 4
P_OUT = PATCH * PATCH * OUT_CH          # 16 (real output width)
N_BATCH = 2
NUM_TOKENS = 64                          # e.g. (16/2)^2 patches


def _round_up(v, m):
    return int(pl.cdiv(v, m)) * m


# ------------------------------ Pallas kernel ---------------------------------
def final_layer_kernel(x_ref, c_ref, w_ada_ref, b_ada_ref, w_lin_ref, b_lin_ref,
                       o_ref):
    # x_ref/c_ref: (rows_tile, H)   w_ada: (H, 2H)   w_lin: (H, P_pad)
    x = x_ref[...].astype(jnp.float32)
    c = c_ref[...].astype(jnp.float32)
    H = x.shape[-1]

    # adaLN modulation: SiLU(c) @ W_ada + b_ada  ->  [shift | scale]
    silu_c = c * jax.nn.sigmoid(c)                       # EUP sigmoid, VPU mul
    mod = jnp.dot(silu_c, w_ada_ref[...],
                  preferred_element_type=jnp.float32) + b_ada_ref[...]
    shift = mod[:, :H]
    scale = mod[:, H:]

    # LayerNorm (no affine, eps=1e-6) + modulate
    mu = jnp.mean(x, axis=-1, keepdims=True)
    var = jnp.mean((x - mu) ** 2, axis=-1, keepdims=True)
    xn = (x - mu) * jax.lax.rsqrt(var + 1e-6)
    xm = xn * (1.0 + scale) + shift

    # Output projection into a lane-dense (rows_tile, P_pad) slab
    o_ref[...] = (jnp.dot(xm, w_lin_ref[...],
                          preferred_element_type=jnp.float32)
                  + b_lin_ref[...]).astype(o_ref.dtype)


# ------------------------------- wrapper --------------------------------------
def _default_row_tiles():
    # Use 2 parallel row tiles only on dual-TensorCore chips (v7x); on
    # v5e/v6e the grid is a serial loop, so keep a single invocation.
    try:
        kind = jax.devices()[0].device_kind.lower()
        if "v7" in kind or "7x" in kind:
            return 2
    except Exception:
        pass
    return 1


def final_layer_pallas(x, c, w_ada, b_ada, w_lin, b_lin, *, num_row_tiles=None):
    """x, c: (N, T, H).  Returns (N, T, P) with P = w_lin.shape[1]."""
    N, T, H = x.shape
    P = w_lin.shape[1]
    if num_row_tiles is None:
        num_row_tiles = _default_row_tiles()

    rows = N * T
    # Rows must split evenly into (8k)-row tiles; pad with zero rows if needed.
    rows_pad = _round_up(rows, 8 * num_row_tiles)
    if rows_pad // num_row_tiles % 8 != 0:
        num_row_tiles = 1
        rows_pad = _round_up(rows, 8)
    rows_tile = rows_pad // num_row_tiles

    # Lane-dense output: pad the projection to a multiple of 128 columns.
    P_pad = _round_up(P, 128)

    x2d = x.reshape(rows, H)
    c2d = c.reshape(rows, H)
    if rows_pad != rows:
        pad = rows_pad - rows
        x2d = jnp.pad(x2d, ((0, pad), (0, 0)))
        c2d = jnp.pad(c2d, ((0, pad), (0, 0)))

    w_lin_p = jnp.pad(w_lin.astype(jnp.float32), ((0, 0), (0, P_pad - P)))
    b_lin_p = jnp.pad(b_lin.astype(jnp.float32), ((0, P_pad - P),))

    out = pl.pallas_call(
        final_layer_kernel,
        out_shape=jax.ShapeDtypeStruct((rows_pad, P_pad), jnp.float32),
        grid=(num_row_tiles,),
        in_specs=[
            pl.BlockSpec((rows_tile, H), lambda i: (i, 0)),     # x rows
            pl.BlockSpec((rows_tile, H), lambda i: (i, 0)),     # c rows
            pl.BlockSpec((H, 2 * H), lambda i: (0, 0)),         # w_ada
            pl.BlockSpec((1, 2 * H), lambda i: (0, 0)),         # b_ada
            pl.BlockSpec((H, P_pad), lambda i: (0, 0)),         # w_lin (padded)
            pl.BlockSpec((1, P_pad), lambda i: (0, 0)),         # b_lin (padded)
        ],
        out_specs=pl.BlockSpec((rows_tile, P_pad), lambda i: (i, 0)),
        compiler_params=pltpu.CompilerParams(
            dimension_semantics=("parallel",)),
    )(x2d, c2d,
      w_ada.astype(jnp.float32), b_ada.astype(jnp.float32).reshape(1, -1),
      w_lin_p, b_lin_p.reshape(1, -1))

    # Slice off padded rows / padded output columns, restore (N, T, P).
    return out[:rows, :P].reshape(N, T, P)


# --------------------------- pure-JAX reference --------------------------------
def final_layer_reference(x, c, w_ada, b_ada, w_lin, b_lin):
    silu_c = c * jax.nn.sigmoid(c)
    mod = silu_c @ w_ada + b_ada
    shift, scale = jnp.split(mod, 2, axis=-1)
    mu = jnp.mean(x, axis=-1, keepdims=True)
    var = jnp.mean((x - mu) ** 2, axis=-1, keepdims=True)
    xn = (x - mu) * jax.lax.rsqrt(var + 1e-6)
    xm = xn * (1.0 + scale) + shift
    return xm @ w_lin + b_lin


# ----------------------------------- main ---------------------------------------
if __name__ == "__main__":
    key = jax.random.PRNGKey(0)
    kx, kc, k1, k2, k3, k4 = jax.random.split(key, 6)

    x = jax.random.normal(kx, (N_BATCH, NUM_TOKENS, HIDDEN), jnp.float32)
    c = jax.random.normal(kc, (N_BATCH, NUM_TOKENS, HIDDEN), jnp.float32)

    # FinalLayer parameters (synthetic deterministic init; PyTorch layout is
    # weight (out, in) — stored here pre-transposed as (in, out)).
    w_ada = jax.random.normal(k1, (HIDDEN, 2 * HIDDEN), jnp.float32) * 0.02
    b_ada = jax.random.normal(k2, (2 * HIDDEN,), jnp.float32) * 0.02
    w_lin = jax.random.normal(k3, (HIDDEN, P_OUT), jnp.float32) * 0.02
    b_lin = jax.random.normal(k4, (P_OUT,), jnp.float32) * 0.02

    fwd = jax.jit(final_layer_pallas)
    out = jax.block_until_ready(fwd(x, c, w_ada, b_ada, w_lin, b_lin))
    assert out.shape == (N_BATCH, NUM_TOKENS, P_OUT), out.shape

    ref = jax.block_until_ready(
        final_layer_reference(x, c, w_ada, b_ada, w_lin, b_lin))
    max_diff = jnp.max(jnp.abs(out - ref))
    assert jnp.allclose(out, ref, atol=2e-3, rtol=2e-3), f"max abs diff {max_diff}"

    print("KERNEL_OK")
</pallas_src>

<mosaic_0001>
module attributes {stable_mosaic.version = 11 : i64} {
  func.func @final_layer_kernel(%arg0: i32, %arg1: memref<128x128xf32, #tpu.memory_space<vmem>>, %arg2: memref<128x128xf32, #tpu.memory_space<vmem>>, %arg3: memref<128x256xf32, #tpu.memory_space<vmem>>, %arg4: memref<1x256xf32, #tpu.memory_space<vmem>>, %arg5: memref<128x128xf32, #tpu.memory_space<vmem>>, %arg6: memref<1x128xf32, #tpu.memory_space<vmem>>, %arg7: memref<128x128xf32, #tpu.memory_space<vmem>>) attributes {dimension_semantics = [#tpu.dimension_semantics<parallel>], iteration_bounds = array<i64: 1>, scalar_prefetch = 0 : i64, scratch_operands = 0 : i64, tpu.core_type = #tpu.core_type<tc>, window_params = [{transform_indices = @transform_0, window_bounds = array<i64: 128, 128>}, {transform_indices = @transform_1, window_bounds = array<i64: 128, 128>}, {pipeline_mode = #tpu.pipeline_mode<synchronous>, transform_indices = @transform_2, window_bounds = array<i64: 128, 256>}, {pipeline_mode = #tpu.pipeline_mode<synchronous>, transform_indices = @transform_3, window_bounds = array<i64: 1, 256>}, {pipeline_mode = #tpu.pipeline_mode<synchronous>, transform_indices = @transform_4, window_bounds = array<i64: 128, 128>}, {pipeline_mode = #tpu.pipeline_mode<synchronous>, transform_indices = @transform_5, window_bounds = array<i64: 1, 128>}, {transform_indices = @transform_6, window_bounds = array<i64: 128, 128>}]} {
    %c0 = arith.constant 0 : index
    %c0_0 = arith.constant 0 : index
    %0 = vector.load %arg1[%c0, %c0_0] : memref<128x128xf32, #tpu.memory_space<vmem>>, vector<128x128xf32>
    %c0_1 = arith.constant 0 : index
    %c0_2 = arith.constant 0 : index
    %1 = vector.load %arg2[%c0_1, %c0_2] : memref<128x128xf32, #tpu.memory_space<vmem>>, vector<128x128xf32>
    %2 = arith.negf %1 : vector<128x128xf32>
    %3 = math.exp %2 : vector<128x128xf32>
    %cst = arith.constant 1.000000e+00 : f32
    %4 = vector.broadcast %cst : f32 to vector<128x128xf32>
    %5 = arith.addf %4, %3 : vector<128x128xf32>
    %6 = arith.divf %4, %5 : vector<128x128xf32>
    %7 = arith.mulf %1, %6 : vector<128x128xf32>
    %c0_3 = arith.constant 0 : index
    %c0_4 = arith.constant 0 : index
    %8 = vector.load %arg3[%c0_3, %c0_4] : memref<128x256xf32, #tpu.memory_space<vmem>>, vector<128x256xf32>
    %cst_5 = arith.constant dense<0.000000e+00> : vector<128x256xf32>
    %9 = tpu.matmul %7, %8, %cst_5 {dimension_numbers = #tpu.dot_dimension_numbers<[1], [0], [0], [1], [0, 0, 1, 1], [], []>} : vector<128x128xf32>, vector<128x256xf32>, vector<128x256xf32> -> vector<128x256xf32>
    %c0_6 = arith.constant 0 : index
    %c0_7 = arith.constant 0 : index
    %10 = vector.load %arg4[%c0_6, %c0_7] : memref<1x256xf32, #tpu.memory_space<vmem>>, vector<1x256xf32>
    %11 = vector.broadcast %10 : vector<1x256xf32> to vector<128x256xf32>
    %12 = arith.addf %9, %11 : vector<128x256xf32>
    %13 = vector.extract_strided_slice %12 {offsets = [0, 0], sizes = [128, 128], strides = [1, 1]} : vector<128x256xf32> to vector<128x128xf32>
    %14 = vector.extract_strided_slice %12 {offsets = [0, 128], sizes = [128, 128], strides = [1, 1]} : vector<128x256xf32> to vector<128x128xf32>
    %cst_8 = arith.constant dense<0.000000e+00> : vector<128xf32>
    %15 = vector.multi_reduction <add>, %0, %cst_8 [1] : vector<128x128xf32> to vector<128xf32>
    %16 = vector.shape_cast %15 : vector<128xf32> to vector<128x1xf32>
    %cst_9 = arith.constant 1.280000e+02 : f32
    %17 = vector.broadcast %cst_9 : f32 to vector<128x1xf32>
    %18 = arith.divf %16, %17 : vector<128x1xf32>
    %19 = vector.broadcast %18 : vector<128x1xf32> to vector<128x128xf32>
    %20 = arith.subf %0, %19 : vector<128x128xf32>
    %21 = arith.mulf %20, %20 : vector<128x128xf32>
    %cst_10 = arith.constant dense<0.000000e+00> : vector<128xf32>
    %22 = vector.multi_reduction <add>, %21, %cst_10 [1] : vector<128x128xf32> to vector<128xf32>
    %23 = vector.shape_cast %22 : vector<128xf32> to vector<128x1xf32>
    %cst_11 = arith.constant 1.280000e+02 : f32
    %24 = vector.broadcast %cst_11 : f32 to vector<128x1xf32>
    %25 = arith.divf %23, %24 : vector<128x1xf32>
    %26 = vector.broadcast %18 : vector<128x1xf32> to vector<128x128xf32>
    %27 = arith.subf %0, %26 : vector<128x128xf32>
    %cst_12 = arith.constant 9.99999997E-7 : f32
    %28 = vector.broadcast %cst_12 : f32 to vector<128x1xf32>
    %29 = arith.addf %25, %28 : vector<128x1xf32>
    %30 = math.rsqrt %29 : vector<128x1xf32>
    %31 = vector.broadcast %30 : vector<128x1xf32> to vector<128x128xf32>
    %32 = arith.mulf %27, %31 : vector<128x128xf32>
    %cst_13 = arith.constant 1.000000e+00 : f32
    %33 = vector.broadcast %cst_13 : f32 to vector<128x128xf32>
    %34 = arith.addf %33, %14 : vector<128x128xf32>
    %35 = arith.mulf %32, %34 : vector<128x128xf32>
    %36 = arith.addf %35, %13 : vector<128x128xf32>
    %c0_14 = arith.constant 0 : index
    %c0_15 = arith.constant 0 : index
    %37 = vector.load %arg5[%c0_14, %c0_15] : memref<128x128xf32, #tpu.memory_space<vmem>>, vector<128x128xf32>
    %cst_16 = arith.constant dense<0.000000e+00> : vector<128x128xf32>
    %38 = tpu.matmul %36, %37, %cst_16 {dimension_numbers = #tpu.dot_dimension_numbers<[1], [0], [0], [1], [0, 0, 1, 1], [], []>} : vector<128x128xf32>, vector<128x128xf32>, vector<128x128xf32> -> vector<128x128xf32>
    %c0_17 = arith.constant 0 : index
    %c0_18 = arith.constant 0 : index
    %39 = vector.load %arg6[%c0_17, %c0_18] : memref<1x128xf32, #tpu.memory_space<vmem>>, vector<1x128xf32>
    %40 = vector.broadcast %39 : vector<1x128xf32> to vector<128x128xf32>
    %41 = arith.addf %38, %40 : vector<128x128xf32>
    %c0_19 = arith.constant 0 : index
    %c0_20 = arith.constant 0 : index
    %42 = vector.load %arg7[%c0_19, %c0_20] : memref<128x128xf32, #tpu.memory_space<vmem>>, vector<128x128xf32>
    tpu.vector_store %arg7[%c0_19, %c0_20], %41 {strides = array<i32>} : memref<128x128xf32, #tpu.memory_space<vmem>>, vector<128x128xf32>,
    return
  }
  func.func @transform_0(%arg0: i32) -> (i32, i32) {
    %c0_i32 = arith.constant 0 : i32
    %c0_i32_0 = arith.constant 0 : i32
    return %arg0, %c0_i32 : i32, i32
  }
  func.func @transform_1(%arg0: i32) -> (i32, i32) {
    %c0_i32 = arith.constant 0 : i32
    %c0_i32_0 = arith.constant 0 : i32
    return %arg0, %c0_i32 : i32, i32
  }
  func.func @transform_2(%arg0: i32) -> (i32, i32) {
    %c0_i32 = arith.constant 0 : i32
    %c0_i32_0 = arith.constant 0 : i32
    %c0_i32_1 = arith.constant 0 : i32
    return %c0_i32, %c0_i32_0 : i32, i32
  }
  func.func @transform_3(%arg0: i32) -> (i32, i32) {
    %c0_i32 = arith.constant 0 : i32
    %c0_i32_0 = arith.constant 0 : i32
    %c0_i32_1 = arith.constant 0 : i32
    return %c0_i32, %c0_i32_0 : i32, i32
  }
  func.func @transform_4(%arg0: i32) -> (i32, i32) {
    %c0_i32 = arith.constant 0 : i32
    %c0_i32_0 = arith.constant 0 : i32
    %c0_i32_1 = arith.constant 0 : i32
    return %c0_i32, %c0_i32_0 : i32, i32
  }
  func.func @transform_5(%arg0: i32) -> (i32, i32) {
    %c0_i32 = arith.constant 0 : i32
    %c0_i32_0 = arith.constant 0 : i32
    %c0_i32_1 = arith.constant 0 : i32
    return %c0_i32, %c0_i32_0 : i32, i32
  }
  func.func @transform_6(%arg0: i32) -> (i32, i32) {
    %c0_i32 = arith.constant 0 : i32
    %c0_i32_0 = arith.constant 0 : i32
    return %arg0, %c0_i32 : i32, i32
  }
}

</mosaic_0001>

<bundles_post_ra>
// kernel: final_layer_pallas.1
= control target key start
LH: loop header
LB: loop body
LE: loop exit
PB: predicated region body
PF: predicated region fallthrough
CT: control target
= control target key end

     0   :  { %11 = vsyncpa [#allocation3], 0  ;;  %s1233_s24 = smov [#allocation2]   ;;  %s1234_s26 = smov 128   ;;  %s2181_s0 = inlined_call_operand.vmem [shape: f32[128,128], index: 0, kind: input, shape index: {}]   ;;  %s2182_s1 = inlined_call_operand.hbm [shape: f32[128,128], index: 1, kind: input, shape index: {}]   ;;  %s2183_s2 = inlined_call_operand.vmem [shape: f32[128,256], index: 2, kind: input, shape index: {}]   ;;  %s2184_s3 = inlined_call_operand.vmem [shape: f32[1,256], index: 3, kind: input, shape index: {}]   ;;  %s2185_s4 = inlined_call_operand.vmem [shape: f32[128,128], index: 4, kind: input, shape index: {}]   ;;  %s2186_s5 = inlined_call_operand.vmem [shape: f32[1,128], index: 5, kind: input, shape index: {}]   ;;  %s2187_s6 = inlined_call_operand.vmem [shape: f32[128,128], index: 6, kind: output, shape index: {}]  }
   0x1   :  { %s18_s23 = sshll.u32 %s2182_s1, 4  ;;  %s20_s25 = sshll.u32 %s1233_s24, 4  ;;  %s19_s23 = int_to_ptr.hbm [resolvable:$true] %s18_s23  ;;  %s21_s25 = int_to_ptr.vmem [resolvable:$true] %s20_s25 }
   0x2   :  { %s1235_s27 = smov 8  }
   0x3   :  { %26 = dma.hbm_to_vmem [thread:$0]  %s19_s23, 2048, %s21_s25, [#allocation3], %s1234_s26, %s1234_s26, %s1235_s27  }
   0x4   :  { %1231 = dma.done.wait [#allocation3], 2048  }
   0x5   :  { %1232 = vsyncadd [#allocation3], 4294965248  ;;  %v1278_v0 = vld [vmem:[%s2181_s0 + $0x10] sm:$0xff]  ;;  %v1283_v1 = vld [vmem:[%s2181_s0] sm:$0xff] }
   0x6   :  { %563 = vadd.xlane.f32.xlu1 %v1278_v0  ;;  %559 = vadd.xlane.f32.xlu0 %v1283_v1  ;;  %v1290_v2 = vld [vmem:[%s2181_s0 + $0x20] sm:$0xff]  ;;  %v1296_v3 = vld [vmem:[%s2183_s2 + $0xf8] sm:$0xff]  ;;  %v1301_v4 = vld [vmem:[%s2183_s2 + $0xe8] sm:$0xff] }
   0x7   :  { %567 = vadd.xlane.f32.xlu2 %v1290_v2  ;;  %494 = vmatpush.msra.mxu1 %v1296_v3  ;;  %v421_v5 = vld [vmem:[%s2183_s2 + $0xf0] sm:$0xff]  ;;  %v419_v6 = vld [vmem:[%s2183_s2 + $0xe0] sm:$0xff]  ;;  %v1313_v7 = vld [vmem:[%s2183_s2 + $0xd8] sm:$0xff] }
   0x8   :  { %429 = vmatpush.msra.mxu0 %v421_v5  ;;  %1056 = vmatpush.msra.mxu3 %v421_v5  ;;  %v417_v8 = vld [vmem:[%s2183_s2 + $0xd0] sm:$0xff]  ;;  %v1322_v9 = vld [vmem:[%s2181_s0 + $0x18] sm:$0xff]  ;;  %v1327_v10 = vld [vmem:[%s2181_s0 + $0x8] sm:$0xff] }
   0x9   :  { %495 = vmatpush.msra.mxu1 %v1301_v4  ;;  %v1332_v11 = vld [vmem:[%s2181_s0 + $0x28] sm:$0xff]  ;;  %v415_v13 = vld [vmem:[%s2183_s2 + $0xc0] sm:$0xff]  ;;  %v1348_v14 = vld [vmem:[%s2183_s2 + $0xb8] sm:$0xff] }
   0xa   :  { %430 = vmatpush.msra.mxu0 %v419_v6  ;;  %1057 = vmatpush.msra.mxu3 %v419_v6  ;;  %v1338_v12 = vld [vmem:[%s2183_s2 + $0xc8] sm:$0xff]  ;;  %v413_v15 = vld [vmem:[%s2183_s2 + $0xb0] sm:$0xff]  ;;  %v411_v17 = vld [vmem:[%s2183_s2 + $0xa0] sm:$0xff] }
   0xb   :  { %496 = vmatpush.msra.mxu1 %v1313_v7  ;;  %v1358_v16 = vld [vmem:[%s2183_s2 + $0xa8] sm:$0xff]  ;;  %v1367_v18 = vld [vmem:[%s2183_s2 + $0x98] sm:$0xff]  ;;  %v1372_v19 = vld [vmem:[%s2181_s0 + $0x30] sm:$0xff] }
   0xc   :  { %431 = vmatpush.msra.mxu0 %v417_v8  ;;  %1058 = vmatpush.msra.mxu3 %v417_v8  ;;  %v409_v20 = vld [vmem:[%s2183_s2 + $0x90] sm:$0xff]  ;;  %v1381_v21 = vld [vmem:[%s2183_s2 + $0x88] sm:$0xff]  ;;  %v407_v22 = vld [vmem:[%s2183_s2 + $0x80] sm:$0xff] }
   0xd   :  { %497 = vmatpush.msra.mxu1 %v1338_v12  ;;  %v1391_v23 = vld [vmem:[%s2183_s2 + $0x78] sm:$0xff]  ;;  %v405_v24 = vld [vmem:[%s2183_s2 + $0x70] sm:$0xff]  ;;  %v1400_v25 = vld [vmem:[%s2183_s2 + $0x68] sm:$0xff] }
   0xe   :  { %565 = vadd.xlane.f32.xlu1 %v1322_v9  ;;  %561 = vadd.xlane.f32.xlu0 %v1327_v10  ;;  %v403_v26 = vld [vmem:[%s2183_s2 + $0x60] sm:$0xff]  ;;  %v1409_v27 = vld [vmem:[%s2183_s2 + $0x58] sm:$0xff]  ;;  %v401_v28 = vld [vmem:[%s2183_s2 + $0x50] sm:$0xff] }
   0xf   :  { %569 = vadd.xlane.f32.xlu2 %v1332_v11  ;;  %432 = vmatpush.msra.mxu0 %v415_v13  ;;  %v1418_v29 = vld [vmem:[%s2183_s2 + $0x48] sm:$0xff]  ;;  %v399_v30 = vld [vmem:[%s2183_s2 + $0x40] sm:$0xff]  ;;  %v1427_v31 = vld [vmem:[%s2183_s2 + $0x38] sm:$0xff] }
  0x10   :  { %1059 = vmatpush.msra.mxu3 %v415_v13  ;;  %498 = vmatpush.msra.mxu1 %v1348_v14  ;;  %v397_v32 = vld [vmem:[%s2183_s2 + $0x30] sm:$0xff]  ;;  %v1436_v33 = vld [vmem:[%s2183_s2 + $0x28] sm:$0xff]  ;;  %v395_v34 = vld [vmem:[%s2183_s2 + $0x20] sm:$0xff] }
  0x11   :  { %433 = vmatpush.msra.mxu0 %v413_v15  ;;  %v1445_v35 = vld [vmem:[%s2183_s2 + $0x18] sm:$0xff]  ;;  %v1451_v36 = vld [vmem:[%s2183_s2 + $0x8] sm:$0xff]  ;;  %v55_v37 = vld [vmem:[#allocation2] sm:$0xff] }
  0x12   :  { %1060 = vmatpush.msra.mxu3 %v413_v15  ;;  %499 = vmatpush.msra.mxu1 %v1358_v16  ;;  %v1040_v38 = vmul.f32 -1.442695, %v55_v37  ;;  %v1455_v39 = vld [vmem:[#allocation2 + $0x8] sm:$0xff]  ;;  %v1458_v44 = vld [vmem:[#allocation2 + $0x10] sm:$0xff]  ;;  %v1461_v54 = vld [vmem:[#allocation2 + $0x18] sm:$0xff] }
  0x13   :  { %434 = vmatpush.msra.mxu0 %v411_v17  ;;  %v1041_v41 = vmul.f32 -1.442695, %v1455_v39  ;;  %v1042_v47 = vmul.f32 -1.442695, %v1458_v44  ;;  %v1043_v57 = vmul.f32 -1.442695, %v1461_v54 }
  0x14   :  { %1061 = vmatpush.msra.mxu3 %v411_v17  ;;  %500 = vmatpush.msra.mxu1 %v1367_v18  ;;  %1109 = vpow2.f32 %v1040_v38  ;;  %v393_v6 = vld [vmem:[%s2183_s2 + $0x10] sm:$0xff]  ;;  %v391_v15 = vld [vmem:[%s2183_s2] sm:$0xff] }
  0x15   :  { %435 = vmatpush.msra.mxu0 %v409_v20  ;;  %1111 = vpow2.f32 %v1041_v41 }
  0x16   :  { %571 = vadd.xlane.f32.xlu1 %v1372_v19  ;;  %501 = vmatpush.msra.mxu1 %v1381_v21 }
  0x17   :  { %1062 = vmatpush.msra.mxu3 %v409_v20  ;;  %436 = vmatpush.msra.mxu0 %v407_v22 }
  0x18   :  { %502 = vmatpush.msra.mxu1 %v1391_v23 }
  0x19   :  { %1063 = vmatpush.msra.mxu3 %v407_v22  ;;  %437 = vmatpush.msra.mxu0 %v405_v24  ;;  %v1470_v22 = vld [vmem:[#allocation2 + $0x20] sm:$0xff] }
  0x1a   :  { %503 = vmatpush.msra.mxu1 %v1400_v25  ;;  %v1110_v40 = vpop.eup %1109 }
  0x1b   :  { %1064 = vmatpush.msra.mxu3 %v405_v24  ;;  %438 = vmatpush.msra.mxu0 %v403_v26  ;;  %v119_v42 = vadd.f32 1.0, %v1110_v40  ;;  %v1112_v43 = vpop.eup %1111 }
  0x1c   :  { %504 = vmatpush.msra.mxu1 %v1409_v27  ;;  %v120_v46 = vadd.f32 1.0, %v1112_v43 }
  0x1d   :  { %1065 = vmatpush.msra.mxu3 %v403_v26  ;;  %439 = vmatpush.msra.mxu0 %v401_v28  ;;  %1113 = vrcp.f32 %v119_v42  ;;  %v146_v51 = vand.u32 2147483648, %v119_v42  ;;  %vm140_vm0 = vweird.f32 %v119_v42  ;;  %v144_v53 = vand.u32 2147483647, %v119_v42 }
  0x1e   :  { %505 = vmatpush.msra.mxu1 %v1418_v29  ;;  %1115 = vrcp.f32 %v120_v46  ;;  %v161_v13 = vand.u32 2147483648, %v120_v46  ;;  %vm155_vm4 = vweird.f32 %v120_v46  ;;  %v159_v20 = vand.u32 2147483647, %v120_v46 }
  0x1f   :  { %1066 = vmatpush.msra.mxu3 %v401_v28  ;;  %440 = vmatpush.msra.mxu0 %v399_v30  ;;  %1117 = vpow2.f32 %v1042_v47  ;;  %v147_v56 = vor.u32 1.1754944e-38, %v146_v51  ;;  %vm145_vm3 = vcmp.eq.f32.partialorder %v144_v53, 8.507059e+37  ;;  %v1044_v28 = vmul.f32 -1.442695, %v1470_v22  ;;  %v1479_v47 = vld [vmem:[#allocation2 + $0x28] sm:$0xff] }
  0x20   :  { %506 = vmatpush.msra.mxu1 %v1427_v31  ;;  %1119 = vpow2.f32 %v1043_v57  ;;  %v162_v26 = vor.u32 1.1754944e-38, %v161_v13  ;;  %vm160_vm7 = vcmp.eq.f32.partialorder %v159_v20, 8.507059e+37 }
  0x21   :  { %1067 = vmatpush.msra.mxu3 %v399_v30  ;;  %441 = vmatpush.msra.mxu0 %v397_v32  ;;  %v1236_v30 = vmov 128.0  }
  0x22   :  { %507 = vmatpush.msra.mxu1 %v1436_v33 }
  0x23   :  { %1068 = vmatpush.msra.mxu3 %v397_v32  ;;  %442 = vmatpush.msra.mxu0 %v395_v34  ;;  %v1114_v45 = vpop.eup %1113 }
  0x24   :  { %508 = vmatpush.msra.mxu1 %v1445_v35  ;;  %v136_v48 = vmul.f32 %v1114_v45, %v119_v42  ;;  %vm141_vm1 = vweird.f32 %v1114_v45  ;;  %v1116_v55 = vpop.eup %1115 }
  0x25   :  { %1069 = vmatpush.msra.mxu3 %v395_v34  ;;  %vm142_vm2 = vmor %vm140_vm0, %vm141_vm1  ;;  %v1118_v58 = vpop.eup %1117  ;;  %v151_v60 = vmul.f32 %v1116_v55, %v120_v46  ;;  %443 = vmatpush.msra.mxu0 %v393_v6  ;;  %vm156_vm5 = vweird.f32 %v1116_v55 }
  0x26   :  { %509 = vmatpush.msra.mxu1 %v1451_v36  ;;  %v137_v49 = vsub.f32 1.0, %v136_v48  ;;  %v121_v62 = vadd.f32 1.0, %v1118_v58  ;;  %v1120_v24 = vpop.eup %1119  ;;  %vm157_vm6 = vmor %vm155_vm4, %vm156_vm5  ;;  %v1045_v48 = vmul.f32 -1.442695, %v1479_v47 }
  0x27   :  { %v152_v5 = vsub.f32 1.0, %v151_v60  ;;  %1070 = vmatpush.msra.mxu3 %v393_v6  ;;  %444 = vmatpush.msra.mxu0 %v391_v15  ;;  %v122_v34 = vadd.f32 1.0, %v1120_v24 }
  0x28   :  { %v138_v50 = vmul.f32 %v1114_v45, %v137_v49  ;;  %1121 = vrcp.f32 %v121_v62  ;;  %v176_v46 = vand.u32 2147483648, %v121_v62  ;;  %vm170_vm8 = vweird.f32 %v121_v62 }
  0x29   :  { %v153_v8 = vmul.f32 %v1116_v55, %v152_v5  ;;  %1071 = vmatpush.msra.mxu3 %v391_v15  ;;  %1123 = vrcp.f32 %v1236_v30  ;;  %vm185_vm12 = vweird.f32 %v122_v34 }
  0x2a   :  { %v139_v52 = vadd.f32 %v1114_v45, %v138_v50  ;;  %1125 = vpow2.f32 %v1044_v28  ;;  %v177_v50 = vor.u32 1.1754944e-38, %v176_v46 }
  0x2b   :  { %v154_v17 = vadd.f32 %v1116_v55, %v153_v8  ;;  %1072 = vmatpush.msrb.mxu3 %v1296_v3  ;;  %1127 = vrcp.f32 %v122_v34 }
  0x2c   :  { %v143_v59 = vsel %vm142_vm2, %v1114_v45, %v139_v52  ;;  %1129 = vpow2.f32 %v1045_v48 }
  0x2d   :  { %v148_v61 = vsel %vm145_vm3, %v147_v56, %v143_v59  ;;  %v158_v32 = vsel %vm157_vm6, %v1116_v55, %v154_v17  ;;  %1073 = vmatpush.msrb.mxu3 %v1301_v4  ;;  %v191_v59 = vand.u32 2147483648, %v122_v34 }
  0x2e   :  { %v375_v63 = vmul.f32 %v148_v61, %v55_v37  ;;  %v1122_v37 = vpop.eup %1121  ;;  %v163_v38 = vsel %vm160_vm7, %v162_v26, %v158_v32 }
  0x2f   :  { %v376_v40 = vmul.f32 %v163_v38, %v1455_v39  ;;  %v166_v41 = vmul.f32 %v1122_v37, %v121_v62  ;;  %1074 = vmatpush.msrb.mxu3 %v1313_v7  ;;  %v1477_v43 = vpop.eup %1123  ;;  %vm171_vm9 = vweird.f32 %v1122_v37  ;;  %v174_v39 = vand.u32 2147483647, %v121_v62 }
  0x30   :  { %510 = vmatmul.f32.vlgmr.msra.gmra.mxu1 %v375_v63  ;;  %445 = vmatmul.f32.vlgmr.msra.gmra.mxu0 %v375_v63  ;;  %v1126_v3 = vpop.eup %1125  ;;  %vm172_vm10 = vmor %vm170_vm8, %vm171_vm9  ;;  %v592_v51 = vmul.f32 128.0, %v1477_v43  ;;  %v189_v62 = vand.u32 2147483647, %v122_v34  ;;  %v192_v63 = vor.u32 1.1754944e-38, %v191_v59  ;;  %vm596_vm0 = vweird.f32 %v1477_v43  ;;  %v1540_v59 = vld [vmem:[%s2181_s0 + $0x38] sm:$0xff] }
  0x31   :  { %v167_v42 = vsub.f32 1.0, %v166_v41  ;;  %1075 = vmatpush.msrb.mxu3 %v1338_v12  ;;  %v1128_v49 = vpop.eup %1127  ;;  %v123_v7 = vadd.f32 1.0, %v1126_v3  ;;  %vm175_vm11 = vcmp.eq.f32.partialorder %v174_v39, 8.507059e+37 }
  0x32   :  { %v181_v52 = vmul.f32 %v1128_v49, %v122_v34  ;;  %v593_v57 = vsub.f32 1.0, %v592_v51  ;;  %v1130_v60 = vpop.eup %1129  ;;  %vm186_vm13 = vweird.f32 %v1128_v49  ;;  %vm190_vm15 = vcmp.eq.f32.partialorder %v189_v62, 8.507059e+37 }
  0x33   :  { %v168_v45 = vmul.f32 %v1122_v37, %v167_v42  ;;  %1076 = vmatpush.msrb.mxu3 %v1348_v14  ;;  %1131 = vrcp.f32 %v123_v7  ;;  %v1488_v14 = vld [vmem:[#allocation2 + $0x30] sm:$0xff]  ;;  %vm187_vm14 = vmor %vm185_vm12, %vm186_vm13  ;;  %vm200_vm1 = vweird.f32 %v123_v7  ;;  %v204_v26 = vand.u32 2147483647, %v123_v7 }
  0x34   :  { %v182_v55 = vsub.f32 1.0, %v181_v52  ;;  %v594_v5 = vmul.f32 %v1477_v43, %v593_v57 }
  0x35   :  { %v169_v4 = vadd.f32 %v1122_v37, %v168_v45  ;;  %1077 = vmatpush.msrb.mxu3 %v1358_v16  ;;  %vm205_vm4 = vcmp.eq.f32.partialorder %v204_v26, 8.507059e+37 }
  0x36   :  { %v183_v58 = vmul.f32 %v1128_v49, %v182_v55  ;;  %v595_v17 = vadd.f32 %v1477_v43, %v594_v5  ;;  %v949_v5 = vld [vmem:[%s2185_s4 + $0x78] sm:$0xff] }
  0x37   :  { %v173_v12 = vsel %vm172_vm10, %v1122_v37, %v169_v4  ;;  %1078 = vmatpush.msrb.mxu3 %v1367_v18  ;;  %v1046_v18 = vmul.f32 -1.442695, %v1488_v14  ;;  %954 = vmatpush.msra.mxu2 %v949_v5 }
  0x38   :  { %513 = vmatmul.f32.gmra.mxu1 %v376_v40  ;;  %448 = vmatmul.f32.gmra.mxu0 %v376_v40  ;;  %v178_v53 = vsel %vm175_vm11, %v177_v50, %v173_v12  ;;  %v184_v61 = vadd.f32 %v1128_v49, %v183_v58  ;;  %v1505_v28 = vsel %vm596_vm0, %v1477_v43, %v595_v17  ;;  %v1563_v17 = vld [vmem:[%s2181_s0 + $0x60] sm:$0xff] }
  0x39   :  { %v377_v56 = vmul.f32 %v178_v53, %v1458_v44  ;;  %1079 = vmatpush.msrb.mxu3 %v1381_v21  ;;  %v1132_v16 = vpop.eup %1131  ;;  %v1491_v44 = vadd.f32 1.0, %v1130_v60 }
  0x3a   :  { %v188_v6 = vsel %vm187_vm14, %v1128_v49, %v184_v61  ;;  %v196_v21 = vmul.f32 %v1132_v16, %v123_v7  ;;  %vm201_vm2 = vweird.f32 %v1132_v16 }
  0x3b   :  { %1080 = vmatpush.msrb.mxu3 %v1391_v23  ;;  %v193_v8 = vsel %vm190_vm15, %v192_v63, %v188_v6  ;;  %1133 = vrcp.f32 %v1491_v44  ;;  %v206_v23 = vand.u32 2147483648, %v123_v7  ;;  %vm202_vm3 = vmor %vm200_vm1, %vm201_vm2  ;;  %vm215_vm5 = vweird.f32 %v1491_v44  ;;  %v948_v6 = vld [vmem:[%s2185_s4 + $0x70] sm:$0xff] }
  0x3c   :  { %v378_v13 = vmul.f32 %v193_v8, %v1461_v54  ;;  %v197_v15 = vsub.f32 1.0, %v196_v21  ;;  %1135 = vpow2.f32 %v1046_v18  ;;  %v67_v18 = vld [vmem:[#allocation2 + $0x60] sm:$0xff]  ;;  %955 = vmatpush.msra.mxu2 %v948_v6 }
  0x3d   :  { %1081 = vmatpush.msrb.mxu3 %v1400_v25  ;;  %v207_v54 = vor.u32 1.1754944e-38, %v206_v23  ;;  %v1052_v8 = vmul.f32 -1.442695, %v67_v18 }
  0x3e   :  { %v198_v20 = vmul.f32 %v1132_v16, %v197_v15 }
  0x3f   :  { %1082 = vmatpush.msrb.mxu3 %v1409_v27 }
  0x40   :  { %516 = vmatmul.f32.gmra.mxu1 %v377_v56  ;;  %451 = vmatmul.f32.gmra.mxu0 %v377_v56  ;;  %v199_v24 = vadd.f32 %v1132_v16, %v198_v20  ;;  %v1568_v20 = vld [vmem:[%s2181_s0 + $0x40] sm:$0xff] }
  0x41   :  { %1083 = vmatpush.msrb.mxu3 %v1418_v29  ;;  %v1134_v25 = vpop.eup %1133 }
  0x42   :  { %v1136_v27 = vpop.eup %1135  ;;  %v203_v30 = vsel %vm202_vm3, %v1132_v16, %v199_v24  ;;  %v211_v32 = vmul.f32 %v1134_v25, %v1491_v44  ;;  %vm216_vm6 = vweird.f32 %v1134_v25 }
  0x43   :  { %1084 = vmatpush.msrb.mxu3 %v1427_v31  ;;  %v208_v34 = vsel %vm205_vm4, %v207_v54, %v203_v30  ;;  %v125_v29 = vadd.f32 1.0, %v1136_v27  ;;  %vm217_vm7 = vmor %vm215_vm5, %vm216_vm6  ;;  %v1581_v27 = vld [vmem:[%s2181_s0 + $0x68] sm:$0xff] }
  0x44   :  { %v379_v40 = vmul.f32 %v208_v34, %v1470_v22  ;;  %v212_v41 = vsub.f32 1.0, %v211_v32 }
  0x45   :  { %1085 = vmatpush.msrb.mxu3 %v1436_v33  ;;  %1137 = vrcp.f32 %v125_v29  ;;  %v221_v33 = vand.u32 2147483648, %v1491_v44  ;;  %v236_v58 = vand.u32 2147483648, %v125_v29  ;;  %vm230_vm9 = vweird.f32 %v125_v29 }
  0x46   :  { %v213_v43 = vmul.f32 %v1134_v25, %v212_v41  ;;  %1139 = vpow2.f32 %v1052_v8  ;;  %v947_v8 = vld [vmem:[%s2185_s4 + $0x68] sm:$0xff] }
  0x47   :  { %1086 = vmatpush.msrb.mxu3 %v1445_v35  ;;  %v237_v61 = vor.u32 1.1754944e-38, %v236_v58  ;;  %956 = vmatpush.msra.mxu2 %v947_v8 }
  0x48   :  { %519 = vmatmul.f32.gmra.mxu1 %v378_v13  ;;  %454 = vmatmul.f32.gmra.mxu0 %v378_v13  ;;  %v214_v22 = vadd.f32 %v1134_v25, %v213_v43 }
  0x49   :  { %1087 = vmatpush.msrb.mxu3 %v1451_v36 }
  0x4a   :  { %v218_v48 = vsel %vm217_vm7, %v1134_v25, %v214_v22  ;;  %v1610_v22 = vld [vmem:[%s2181_s0 + $0x78] sm:$0xff] }
  0x4b   :  { %v1138_v49 = vpop.eup %1137 }
  0x4c   :  { %v226_v7 = vmul.f32 %v1138_v49, %v125_v29  ;;  %vm231_vm10 = vweird.f32 %v1138_v49  ;;  %v1140_v24 = vpop.eup %1139 }
  0x4d   :  { %vm232_vm11 = vmor %vm230_vm9, %vm231_vm10  ;;  %v131_v26 = vadd.f32 1.0, %v1140_v24  ;;  %v1643_v24 = vld [vmem:[#allocation2 + $0x40] sm:$0xff] }
  0x4e   :  { %v227_v53 = vsub.f32 1.0, %v226_v7 }
  0x4f   :  { %1141 = vrcp.f32 %v131_v26  ;;  %vm320_vm13 = vweird.f32 %v131_v26  ;;  %v324_v41 = vand.u32 2147483647, %v131_v26 }
  0x50   :  { %522 = vmatmul.f32.gmra.mxu1 %v379_v40  ;;  %457 = vmatmul.f32.gmra.mxu0 %v379_v40  ;;  %v228_v60 = vmul.f32 %v1138_v49, %v227_v53  ;;  %v1603_v40 = vld [vmem:[%s2181_s0 + $0x50] sm:$0xff] }
  0x51   :  { %vm325_vm0 = vcmp.eq.f32.partialorder %v324_v41, 8.507059e+37 }
  0x52   :  { %v229_v62 = vadd.f32 %v1138_v49, %v228_v60  ;;  %v1628_v60 = vld [vmem:[#allocation2 + $0x38] sm:$0xff] }
  0x55   :  { %v1142_v32 = vpop.eup %1141 }
  0x56   :  { %vm321_vm14 = vweird.f32 %v1142_v32 }
  0x57   :  { %vm322_vm15 = vmor %vm320_vm13, %vm321_vm14 }
  0x79   :  { %v564_v37 = vpop.xlane.xlu1 %563  ;;  %v560_v38 = vpop.xlane.xlu0 %559 }
  0x7a   :  { %v600_v42 = vmul.f32 %v1505_v28, %v564_v37  ;;  %v598_v31 = vmul.f32 %v1505_v28, %v560_v38  ;;  %v568_v39 = vpop.xlane.xlu2 %567  ;;  %v1598_v37 = vld [vmem:[%s2181_s0 + $0x70] sm:$0xff]  ;;  %v326_v38 = vand.u32 2147483648, %v131_v26 }
  0x7b   :  { %v602_v57 = vmul.f32 %v1505_v28, %v568_v39 }
  0x7c   :  { %v1514_v45 = vsub.f32 %v1278_v0, %v600_v42  ;;  %v1517_v46 = vsub.f32 %v1283_v1, %v598_v31  ;;  %v219_v0 = vand.u32 2147483647, %v1491_v44  ;;  %v222_v1 = vor.u32 1.1754944e-38, %v221_v33 }
  0x7d   :  { %v1548_v16 = vsub.f32 %v1290_v2, %v602_v57  ;;  %v233_v44 = vsel %vm232_vm11, %v1138_v49, %v229_v62  ;;  %v327_v31 = vor.u32 1.1754944e-38, %v326_v38 }
  0x7e   :  { %v632_v3 = vmul.f32 %v1514_v45, %v1514_v45  ;;  %v630_v35 = vmul.f32 %v1517_v46, %v1517_v46  ;;  %vm220_vm8 = vcmp.eq.f32.partialorder %v219_v0, 8.507059e+37 }
  0x7f   :  { %v223_v50 = vsel %vm220_vm8, %v222_v1, %v218_v48  ;;  %v634_v2 = vmul.f32 %v1548_v16, %v1548_v16  ;;  %v68_v1 = vld [vmem:[#allocation2 + $0x68] sm:$0xff]  ;;  %v1622_v48 = vld [vmem:[#allocation2 + $0x70] sm:$0xff] }
  0x80   :  { %650 = vadd.xlane.f32.xlu1 %v632_v3  ;;  %646 = vadd.xlane.f32.xlu0 %v630_v35  ;;  %v380_v12 = vmul.f32 %v223_v50, %v1479_v47  ;;  %v1615_v35 = vld [vmem:[%s2181_s0 + $0x58] sm:$0xff]  ;;  %v1053_v39 = vmul.f32 -1.442695, %v68_v1 }
  0x81   :  { %v566_v36 = vpop.xlane.xlu1 %565  ;;  %v562_v4 = vpop.xlane.xlu0 %561  ;;  %v1625_v50 = vld [vmem:[#allocation2 + $0x78] sm:$0xff] }
  0x82   :  { %v601_v51 = vmul.f32 %v1505_v28, %v566_v36  ;;  %v599_v52 = vmul.f32 %v1505_v28, %v562_v4  ;;  %525 = vmatmul.f32.gmra.mxu1 %v380_v12  ;;  %460 = vmatmul.f32.gmra.mxu0 %v380_v12  ;;  %v570_v63 = vpop.xlane.xlu2 %569  ;;  %1143 = vpow2.f32 %v1053_v39  ;;  %v1054_v36 = vmul.f32 -1.442695, %v1622_v48 }
  0x83   :  { %v603_v15 = vmul.f32 %v1505_v28, %v570_v63 }
  0x84   :  { %v1531_v55 = vsub.f32 %v1322_v9, %v601_v51  ;;  %v1534_v56 = vsub.f32 %v1327_v10, %v599_v52  ;;  %v234_v10 = vand.u32 2147483647, %v125_v29  ;;  %v316_v29 = vmul.f32 %v1142_v32, %v131_v26 }
  0x85   :  { %1145 = vpow2.f32 %v1054_v36  ;;  %v1055_v51 = vmul.f32 -1.442695, %v1625_v50 }
  0x86   :  { %v633_v47 = vmul.f32 %v1531_v55, %v1531_v55  ;;  %v631_v9 = vmul.f32 %v1534_v56, %v1534_v56  ;;  %vm235_vm12 = vcmp.eq.f32.partialorder %v234_v10, 8.507059e+37 }
  0x87   :  { %v238_v21 = vsel %vm235_vm12, %v237_v61, %v233_v44 }
  0x88   :  { %652 = vadd.xlane.f32.xlu1 %v633_v47  ;;  %573 = vadd.xlane.f32.xlu0 %v1540_v59  ;;  %v381_v13 = vmul.f32 %v238_v21, %v1488_v14  ;;  %v1572_v14 = vsub.f32 %v1332_v11, %v603_v15  ;;  %v1586_v11 = vld [vmem:[%s2181_s0 + $0x48] sm:$0xff]  ;;  %v1144_v49 = vpop.eup %1143  ;;  %v946_v15 = vld [vmem:[%s2185_s4 + $0x60] sm:$0xff] }
  0x89   :  { %648 = vadd.xlane.f32.xlu2 %v631_v9  ;;  %v572_v23 = vpop.xlane.xlu1 %571  ;;  %v132_v4 = vadd.f32 1.0, %v1144_v49  ;;  %v1047_v9 = vmul.f32 -1.442695, %v1628_v60  ;;  %957 = vmatpush.msra.mxu2 %v946_v15  ;;  %v942_v49 = vld [vmem:[%s2185_s4 + $0x40] sm:$0xff] }
  0x8a   :  { %528 = vmatmul.f32.gmra.mxu1 %v381_v13  ;;  %463 = vmatmul.f32.gmra.mxu0 %v381_v13  ;;  %v635_v25 = vmul.f32 %v1572_v14, %v1572_v14  ;;  %v604_v54 = vmul.f32 %v1505_v28, %v572_v23 }
  0x8b   :  { %1147 = vrcp.f32 %v132_v4  ;;  %v1146_v7 = vpop.eup %1145  ;;  %v341_v47 = vand.u32 2147483648, %v132_v4  ;;  %vm335_vm1 = vweird.f32 %v132_v4  ;;  %v339_v62 = vand.u32 2147483647, %v132_v4 }
  0x8c   :  { %v1590_v30 = vsub.f32 %v1372_v19, %v604_v54  ;;  %v317_v19 = vsub.f32 1.0, %v316_v29  ;;  %v133_v12 = vadd.f32 1.0, %v1146_v7  ;;  %1149 = vpow2.f32 %v1055_v51 }
  0x8d   :  { %v342_v44 = vor.u32 1.1754944e-38, %v341_v47  ;;  %vm340_vm4 = vcmp.eq.f32.partialorder %v339_v62, 8.507059e+37  ;;  %v1048_v54 = vmul.f32 -1.442695, %v1643_v24 }
  0x8e   :  { %v636_v34 = vmul.f32 %v1590_v30, %v1590_v30  ;;  %v318_v42 = vmul.f32 %v1142_v32, %v317_v19  ;;  %1151 = vrcp.f32 %v133_v12  ;;  %vm350_vm5 = vweird.f32 %v133_v12 }
  0x8f   :  { %1153 = vpow2.f32 %v1047_v9  ;;  %v354_v29 = vand.u32 2147483647, %v133_v12  ;;  %v940_v9 = vld [vmem:[%s2185_s4 + $0x30] sm:$0xff] }
  0x90   :  { %654 = vadd.xlane.f32.xlu1 %v634_v2  ;;  %583 = vadd.xlane.f32.xlu0 %v1563_v17  ;;  %v319_v43 = vadd.f32 %v1142_v32, %v318_v42  ;;  %v944_v42 = vld [vmem:[%s2185_s4 + $0x50] sm:$0xff] }
  0x91   :  { %575 = vadd.xlane.f32.xlu2 %v1568_v20  ;;  %v1148_v52 = vpop.eup %1147  ;;  %vm355_vm8 = vcmp.eq.f32.partialorder %v354_v29, 8.507059e+37 }
  0x92   :  { %v323_v33 = vsel %vm322_vm15, %v1142_v32, %v319_v43  ;;  %v331_v53 = vmul.f32 %v1148_v52, %v132_v4  ;;  %v1150_v10 = vpop.eup %1149  ;;  %vm336_vm2 = vweird.f32 %v1148_v52  ;;  %v945_v32 = vld [vmem:[%s2185_s4 + $0x58] sm:$0xff]  ;;  %v1666_v4 = vld [vmem:[#allocation2 + $0x48] sm:$0xff] }
  0x93   :  { %v328_v3 = vsel %vm325_vm0, %v327_v31, %v323_v33  ;;  %vm337_vm3 = vmor %vm335_vm1, %vm336_vm2  ;;  %958 = vmatpush.msra.mxu2 %v945_v32 }
  0x94   :  { %v1617_v0 = vmul.f32 %v328_v3, %v67_v18  ;;  %v332_v57 = vsub.f32 1.0, %v331_v53  ;;  %v1152_v63 = vpop.eup %1151  ;;  %v1631_v18 = vadd.f32 1.0, %v1150_v10  ;;  %v943_v3 = vld [vmem:[%s2185_s4 + $0x48] sm:$0xff] }
  0x95   :  { %v1154_v26 = vpop.eup %1153  ;;  %vm351_vm6 = vweird.f32 %v1152_v63  ;;  %959 = vmatpush.msra.mxu2 %v944_v42 }
  0x96   :  { %481 = vmatmul.f32.vlgmr.msra.gmra.mxu3 %v1617_v0  ;;  %v333_v58 = vmul.f32 %v1148_v52, %v332_v57  ;;  %1155 = vrcp.f32 %v1631_v18  ;;  %vm352_vm7 = vmor %vm350_vm5, %vm351_vm6  ;;  %v1649_v41 = vadd.f32 1.0, %v1154_v26  ;;  %v371_v51 = vand.u32 2147483648, %v1631_v18 }
  0x97   :  { %1088 = vmatpush.msra.mxu3 %v949_v5  ;;  %1157 = vpow2.f32 %v1048_v54  ;;  %960 = vmatpush.msra.mxu2 %v943_v3  ;;  %vm365_vm9 = vweird.f32 %v1631_v18  ;;  %v369_v53 = vand.u32 2147483647, %v1631_v18 }
  0x98   :  { %656 = vadd.xlane.f32.xlu1 %v635_v25  ;;  %585 = vadd.xlane.f32.xlu0 %v1581_v27  ;;  %v334_v61 = vadd.f32 %v1148_v52, %v333_v58  ;;  %v356_v25 = vand.u32 2147483648, %v133_v12  ;;  %1159 = vrcp.f32 %v1649_v41  ;;  %v372_v58 = vor.u32 1.1754944e-38, %v371_v51 }
  0x99   :  { %577 = vadd.xlane.f32.xlu2 %v1586_v11  ;;  %1089 = vmatpush.msra.mxu3 %v948_v6  ;;  %v346_v6 = vmul.f32 %v1152_v63, %v133_v12  ;;  %vm370_vm12 = vcmp.eq.f32.partialorder %v369_v53, 8.507059e+37  ;;  %vm245_vm13 = vweird.f32 %v1649_v41 }
  0x9a   :  { %v338_v5 = vsel %vm337_vm3, %v1148_v52, %v334_v61  ;;  %v357_v19 = vor.u32 1.1754944e-38, %v356_v25  ;;  %961 = vmatpush.msra.mxu2 %v942_v49  ;;  %v1049_v52 = vmul.f32 -1.442695, %v1666_v4 }
  0x9b   :  { %v343_v21 = vsel %vm340_vm4, %v342_v44, %v338_v5  ;;  %v347_v2 = vsub.f32 1.0, %v346_v6  ;;  %1090 = vmatpush.msra.mxu3 %v947_v8  ;;  %v938_v5 = vld [vmem:[%s2185_s4 + $0x20] sm:$0xff]  ;;  %v1693_v8 = vld [vmem:[#allocation2 + $0x50] sm:$0xff] }
  0x9c   :  { %v1637_v13 = vmul.f32 %v343_v21, %v68_v1  ;;  %v1156_v38 = vpop.eup %1155  ;;  %1161 = vpow2.f32 %v1049_v52  ;;  %v251_v21 = vand.u32 2147483648, %v1649_v41 }
  0x9d   :  { %v348_v23 = vmul.f32 %v1152_v63, %v347_v2  ;;  %1091 = vmatpush.msra.mxu3 %v946_v15  ;;  %v361_v43 = vmul.f32 %v1156_v38, %v1631_v18  ;;  %v1158_v7 = vpop.eup %1157  ;;  %vm366_vm10 = vweird.f32 %v1156_v38  ;;  %v1050_v15 = vmul.f32 -1.442695, %v1693_v8 }
  0x9e   :  { %484 = vmatmul.f32.gmra.mxu3 %v1637_v13  ;;  %v1160_v57 = vpop.eup %1159  ;;  %vm367_vm11 = vmor %vm365_vm9, %vm366_vm10  ;;  %v1675_v47 = vadd.f32 1.0, %v1158_v7  ;;  %v252_v25 = vor.u32 1.1754944e-38, %v251_v21 }
  0x9f   :  { %1092 = vmatpush.msra.mxu3 %v945_v32  ;;  %v362_v39 = vsub.f32 1.0, %v361_v43  ;;  %v241_v61 = vmul.f32 %v1160_v57, %v1649_v41  ;;  %vm246_vm14 = vweird.f32 %v1160_v57  ;;  %v935_v43 = vld [vmem:[%s2185_s4 + $0x8] sm:$0xff] }
  0xa0   :  { %658 = vadd.xlane.f32.xlu1 %v636_v34  ;;  %587 = vadd.xlane.f32.xlu0 %v1598_v37  ;;  %v349_v34 = vadd.f32 %v1152_v63, %v348_v23  ;;  %1163 = vrcp.f32 %v1675_v47  ;;  %v937_v23 = vld [vmem:[%s2185_s4 + $0x18] sm:$0xff]  ;;  %vm247_vm15 = vmor %vm245_vm13, %vm246_vm14  ;;  %vm260_vm1 = vweird.f32 %v1675_v47 }
  0xa1   :  { %579 = vadd.xlane.f32.xlu2 %v1603_v40  ;;  %1093 = vmatpush.msra.mxu3 %v944_v42  ;;  %v363_v36 = vmul.f32 %v1156_v38, %v362_v39  ;;  %v242_v18 = vsub.f32 1.0, %v241_v61  ;;  %1165 = vpow2.f32 %v1050_v15 }
  0xa2   :  { %v353_v31 = vsel %vm352_vm7, %v1152_v63, %v349_v34  ;;  %v939_v63 = vld [vmem:[%s2185_s4 + $0x28] sm:$0xff]  ;;  %v1162_v2 = vpop.eup %1161 }
  0xa3   :  { %v358_v33 = vsel %vm355_vm8, %v357_v19, %v353_v31  ;;  %1094 = vmatpush.msra.mxu3 %v943_v3  ;;  %v364_v12 = vadd.f32 %v1156_v38, %v363_v36  ;;  %v243_v6 = vmul.f32 %v1160_v57, %v242_v18  ;;  %v1701_v54 = vadd.f32 1.0, %v1162_v2  ;;  %v936_v19 = vld [vmem:[%s2185_s4 + $0x10] sm:$0xff] }
  0xa4   :  { %v1660_v1 = vmul.f32 %v358_v33, %v1622_v48  ;;  %v941_v48 = vld [vmem:[%s2185_s4 + $0x38] sm:$0xff]  ;;  %v266_v3 = vand.u32 2147483648, %v1675_v47 }
  0xa5   :  { %1095 = vmatpush.msra.mxu3 %v942_v49  ;;  %962 = vmatpush.msra.mxu2 %v941_v48  ;;  %v368_v10 = vsel %vm367_vm11, %v1156_v38, %v364_v12  ;;  %v244_v26 = vadd.f32 %v1160_v57, %v243_v6  ;;  %1167 = vrcp.f32 %v1701_v54  ;;  %v934_v49 = vld [vmem:[%s2185_s4] sm:$0xff]  ;;  %v281_v21 = vand.u32 2147483648, %v1701_v54 }
  0xa6   :  { %487 = vmatmul.f32.gmra.mxu3 %v1660_v1  ;;  %v373_v62 = vsel %vm370_vm12, %v372_v58, %v368_v10  ;;  %v1164_v32 = vpop.eup %1163  ;;  %v267_v7 = vor.u32 1.1754944e-38, %v266_v3  ;;  %vm275_vm5 = vweird.f32 %v1701_v54  ;;  %v279_v15 = vand.u32 2147483647, %v1701_v54 }
  0xa7   :  { %1096 = vmatpush.msra.mxu3 %v941_v48  ;;  %963 = vmatpush.msra.mxu2 %v940_v9  ;;  %v1686_v44 = vmul.f32 %v373_v62, %v1625_v50  ;;  %v249_v50 = vand.u32 2147483647, %v1649_v41  ;;  %v248_v29 = vsel %vm247_vm15, %v1160_v57, %v244_v26  ;;  %v256_v38 = vmul.f32 %v1164_v32, %v1675_v47  ;;  %v1166_v39 = vpop.eup %1165 }
  0xa8   :  { %589 = vadd.xlane.f32.xlu0 %v1610_v22  ;;  %vm261_vm2 = vweird.f32 %v1164_v32  ;;  %v1721_v51 = vadd.f32 1.0, %v1166_v39  ;;  %v282_v26 = vor.u32 1.1754944e-38, %v281_v21  ;;  %vm280_vm8 = vcmp.eq.f32.partialorder %v279_v15, 8.507059e+37 }
  0xa9   :  { %581 = vadd.xlane.f32.xlu2 %v1615_v35  ;;  %1097 = vmatpush.msra.mxu3 %v940_v9  ;;  %vm250_vm0 = vcmp.eq.f32.partialorder %v249_v50, 8.507059e+37  ;;  %v257_v31 = vsub.f32 1.0, %v256_v38  ;;  %vm262_vm3 = vmor %vm260_vm1, %vm261_vm2  ;;  %v1727_v9 = vld [vmem:[#allocation2 + $0x58] sm:$0xff] }
  0xaa   :  { %964 = vmatpush.msra.mxu2 %v939_v63  ;;  %v253_v41 = vsel %vm250_vm0, %v252_v25, %v248_v29  ;;  %1169 = vrcp.f32 %v1721_v51  ;;  %v1051_v2 = vmul.f32 -1.442695, %v1727_v9  ;;  %vm290_vm11 = vweird.f32 %v1721_v51 }
  0xab   :  { %1098 = vmatpush.msra.mxu3 %v939_v63  ;;  %v382_v42 = vmul.f32 %v253_v41, %v1628_v60  ;;  %v258_v33 = vmul.f32 %v1164_v32, %v257_v31  ;;  %v264_v60 = vand.u32 2147483647, %v1675_v47  ;;  %v1168_v52 = vpop.eup %1167 }
  0xac   :  { %965 = vmatpush.msra.mxu2 %v938_v5  ;;  %v271_v53 = vmul.f32 %v1168_v52, %v1701_v54  ;;  %vm276_vm6 = vweird.f32 %v1168_v52 }
  0xad   :  { %1099 = vmatpush.msra.mxu3 %v938_v5  ;;  %v1703_v34 = vpop.f32.mrf.mxu1  ;;  %531 = vmatmul.f32.gmra.mxu1 %v382_v42  ;;  %v259_v36 = vadd.f32 %v1164_v32, %v258_v33  ;;  %vm265_vm4 = vcmp.eq.f32.partialorder %v264_v60, 8.507059e+37  ;;  %v423_v5 = vld [vmem:[%s2184_s3] sm:$0x3]  ;;  %vm277_vm7 = vmor %vm275_vm5, %vm276_vm6  ;;  %v446_v31 = vpop.f32.mrf.mxu0 }
  0xae   :  { %490 = vmatmul.f32.gmra.mxu3 %v1686_v44  ;;  %966 = vmatpush.msra.mxu2 %v937_v23  ;;  %v272_v62 = vsub.f32 1.0, %v271_v53 }
  0xaf   :  { %1100 = vmatpush.msra.mxu3 %v937_v23  ;;  %466 = vmatmul.f32.gmra.mxu0 %v382_v42  ;;  %v263_v12 = vsel %vm262_vm3, %v1164_v32, %v259_v36  ;;  %v1748_v23 = vperm.slane %v423_v5, 1 }
  0xb0   :  { %967 = vmatpush.msra.mxu2 %v936_v19  ;;  %v268_v47 = vsel %vm265_vm4, %v267_v7, %v263_v12  ;;  %v273_v6 = vmul.f32 %v1168_v52, %v272_v62 }
  0xb1   :  { %1101 = vmatpush.msra.mxu3 %v936_v19  ;;  %v383_v61 = vmul.f32 %v268_v47, %v1643_v24  ;;  %v1744_v24 = vpop.eup %1169  ;;  %v512_v36 = vadd.f32 %v1703_v34, %v1748_v23 }
  0xb2   :  { %968 = vmatpush.msra.mxu2 %v935_v43  ;;  %v274_v50 = vadd.f32 %v1168_v52, %v273_v6  ;;  %vm291_vm12 = vweird.f32 %v1744_v24 }
  0xb3   :  { %1102 = vmatpush.msra.mxu3 %v935_v43  ;;  %vm1816_vm13 = vmor %vm290_vm11, %vm291_vm12 }
  0xb4   :  { %969 = vmatpush.msra.mxu2 %v934_v49  ;;  %v278_v29 = vsel %vm277_vm7, %v1168_v52, %v274_v50 }
  0xb5   :  { %1103 = vmatpush.msra.mxu3 %v934_v49  ;;  %v1729_v10 = vpop.f32.mrf.mxu1  ;;  %534 = vmatmul.f32.gmra.mxu1 %v383_v61  ;;  %v283_v42 = vsel %vm280_vm8, %v282_v26, %v278_v29 }
  0xb6   :  { %546 = vmatmul.f32.vlgmr.msrb.gmra.mxu3 %v1617_v0  ;;  %v384_v43 = vmul.f32 %v283_v42, %v1666_v4  ;;  %v294_v42 = vand.u32 2147483647, %v1721_v51 }
  0xb7   :  { %469 = vmatmul.f32.gmra.mxu0 %v383_v61 }
  0xb8   :  { %vm1837_vm15 = vcmp.eq.f32.partialorder %v294_v42, 8.507059e+37 }
  0xbd   :  { %v517_v52 = vpop.f32.mrf.mxu1  ;;  %537 = vmatmul.f32.gmra.mxu1 %v384_v43 }
  0xbe   :  { %549 = vmatmul.f32.gmra.mxu3 %v1637_v13  ;;  %v286_v13 = vmul.f32 %v1744_v24, %v1721_v51  ;;  %v1777_v53 = vadd.f32 %v517_v52, %v1748_v23  ;;  %v515_v52 = vadd.f32 %v1729_v10, %v1748_v23 }
  0xbf   :  { %472 = vmatmul.f32.gmra.mxu0 %v384_v43 }
  0xc6   :  { %552 = vmatmul.f32.gmra.mxu3 %v1660_v1 }
  0xce   :  { %555 = vmatmul.f32.gmra.mxu3 %v1686_v44 }
  0xf3   :  { %v651_v0 = vpop.xlane.xlu1 %650  ;;  %v647_v48 = vpop.xlane.xlu0 %646 }
  0xf4   :  { %v680_v57 = vmul.f32 %v651_v0, %v1505_v28  ;;  %v678_v58 = vmul.f32 %v647_v48, %v1505_v28  ;;  %v287_v0 = vsub.f32 1.0, %v286_v13 }
  0xf6   :  { %v1732_v63 = vadd.f32 1e-06, %v680_v57  ;;  %v1734_v18 = vadd.f32 1e-06, %v678_v58  ;;  %v886_v57 = vadd.f32 1.0, %v512_v36  ;;  %v1780_v58 = vperm.slane %v423_v5, 0 }
  0xf7   :  { %v288_v61 = vmul.f32 %v1744_v24, %v287_v0 }
  0xf8   :  { %1171 = vrsqrt.f32 %v1732_v63  ;;  %vm716_vm9 = vweird.f32 %v1734_v18  ;;  %v447_v36 = vadd.f32 %v446_v31, %v1780_v58  ;;  %vm736_vm0 = vweird.f32 %v1732_v63 }
  0xf9   :  { %1173 = vrsqrt.f32 %v1734_v18 }
  0xfa   :  { %1175 = vpow2.f32 %v1051_v2 }
  0xfb   :  { %v653_v25 = vpop.xlane.xlu1 %652  ;;  %v574_v32 = vpop.xlane.xlu0 %573 }
  0xfc   :  { %v681_v38 = vmul.f32 %v653_v25, %v1505_v28  ;;  %v649_v19 = vpop.xlane.xlu2 %648  ;;  %v605_v41 = vmul.f32 %v1505_v28, %v574_v32 }
  0xfd   :  { %v679_v54 = vmul.f32 %v649_v19, %v1505_v28 }
  0xfe   :  { %v1756_v33 = vpop.eup %1171  ;;  %v1758_v3 = vadd.f32 1e-06, %v681_v38  ;;  %v1761_v39 = vsub.f32 %v1540_v59, %v605_v41  ;;  %v1799_v38 = vpop.f32.mrf.mxu0  ;;  %v289_v41 = vadd.f32 %v1744_v24, %v288_v61 }
  0xff   :  { %v1174_v49 = vpop.eup %1173  ;;  %v731_v60 = vmul.f32 %v1756_v33, %v1732_v63  ;;  %v1767_v7 = vadd.f32 1e-06, %v679_v54  ;;  %v296_v54 = vand.u32 2147483648, %v1721_v51  ;;  %vm737_vm1 = vweird.f32 %v1756_v33 }
 0x100   :  { %v711_v4 = vmul.f32 %v1174_v49, %v1734_v18  ;;  %1177 = vrsqrt.f32 %v1758_v3  ;;  %v1176_v59 = vpop.eup %1175  ;;  %v637_v48 = vmul.f32 %v1761_v39, %v1761_v39  ;;  %vm717_vm10 = vweird.f32 %v1174_v49  ;;  %vm1864_vm4 = vmor %vm736_vm0, %vm737_vm1 }
 0x101   :  { %1179 = vrsqrt.f32 %v1767_v7  ;;  %v732_v34 = vmul.f32 %v1756_v33, %v731_v60  ;;  %v1785_v50 = vadd.f32 1.0, %v1176_v59  ;;  %vm718_vm14 = vmor %vm716_vm9, %vm717_vm10  ;;  %v293_v10 = vsel %vm1816_vm13, %v1744_v24, %v289_v41 }
 0x102   :  { %v712_v12 = vmul.f32 %v1174_v49, %v711_v4  ;;  %660 = vadd.xlane.f32.xlu2 %v637_v48  ;;  %vm726_vm3 = vweird.f32 %v1767_v7  ;;  %vm746_vm6 = vweird.f32 %v1758_v3 }
 0x103   :  { %v655_v1 = vpop.xlane.xlu1 %654  ;;  %v584_v47 = vpop.xlane.xlu0 %583  ;;  %v733_v26 = vmul.f32 0.5, %v732_v34  ;;  %vm305_vm8 = vweird.f32 %v1785_v50  ;;  %v311_v41 = vand.u32 2147483648, %v1785_v50 }
 0x104   :  { %v713_v62 = vmul.f32 0.5, %v712_v12  ;;  %v682_v6 = vmul.f32 %v655_v1, %v1505_v28  ;;  %v576_v21 = vpop.xlane.xlu2 %575  ;;  %v610_v2 = vmul.f32 %v1505_v28, %v584_v47  ;;  %v297_v12 = vor.u32 1.1754944e-38, %v296_v54 }
 0x105   :  { %v606_v15 = vmul.f32 %v1505_v28, %v576_v21  ;;  %v734_v51 = vsub.f32 1.5, %v733_v26 }
 0x106   :  { %v1790_v5 = vpop.eup %1177  ;;  %v714_v25 = vsub.f32 1.5, %v713_v62  ;;  %v1792_v32 = vadd.f32 1e-06, %v682_v6  ;;  %v1795_v29 = vsub.f32 %v1563_v17, %v610_v2 }
 0x107   :  { %v1797_v13 = vpop.eup %1179  ;;  %v1802_v19 = vsub.f32 %v1568_v20, %v606_v15  ;;  %v741_v60 = vmul.f32 %v1790_v5, %v1758_v3  ;;  %v735_v63 = vmul.f32 %v1756_v33, %v734_v51  ;;  %vm747_vm7 = vweird.f32 %v1790_v5 }
 0x108   :  { %v715_v43 = vmul.f32 %v1174_v49, %v714_v25  ;;  %v721_v17 = vmul.f32 %v1797_v13, %v1767_v7  ;;  %1181 = vrsqrt.f32 %v1792_v32  ;;  %v642_v44 = vmul.f32 %v1795_v29, %v1795_v29  ;;  %vm1910_vm10 = vmor %vm746_vm6, %vm747_vm7 }
 0x109   :  { %v638_v0 = vmul.f32 %v1802_v19, %v1802_v19  ;;  %1183 = vrcp.f32 %v1785_v50  ;;  %vm727_vm2 = vweird.f32 %v1797_v13  ;;  %v298_v25 = vsel %vm1837_vm15, %v297_v12, %v293_v10 }
 0x10a   :  { %v719_v4 = vsel %vm718_vm14, %v1174_v49, %v715_v43  ;;  %v722_v59 = vmul.f32 %v1797_v13, %v721_v17  ;;  %v742_v49 = vmul.f32 %v1790_v5, %v741_v60  ;;  %670 = vadd.xlane.f32.xlu1 %v642_v44  ;;  %vm728_vm5 = vmor %vm726_vm3, %vm727_vm2  ;;  %v887_v7 = vadd.f32 1.0, %v515_v52 }
 0x10b   :  { %v870_v18 = vmul.f32 %v719_v4, %v1517_v46  ;;  %662 = vadd.xlane.f32.xlu0 %v638_v0  ;;  %v657_v48 = vpop.xlane.xlu1 %656  ;;  %v586_v31 = vpop.xlane.xlu0 %585  ;;  %v385_v51 = vmul.f32 %v298_v25, %v1693_v8  ;;  %v450_v52 = vadd.f32 %v1799_v38, %v1780_v58  ;;  %v888_v4 = vadd.f32 1.0, %v1777_v53 }
 0x10c   :  { %v723_v1 = vmul.f32 0.5, %v722_v59  ;;  %v683_v47 = vmul.f32 %v657_v48, %v1505_v28  ;;  %v578_v61 = vpop.xlane.xlu2 %577  ;;  %v611_v46 = vmul.f32 %v1505_v28, %v586_v31  ;;  %v743_v42 = vmul.f32 0.5, %v742_v49  ;;  %v520_v0 = vpop.f32.mrf.mxu1 }
 0x10d   :  { %v902_v62 = vmul.f32 %v886_v57, %v870_v18  ;;  %v607_v24 = vmul.f32 %v1505_v28, %v578_v61  ;;  %540 = vmatmul.f32.gmra.mxu1 %v385_v51  ;;  %475 = vmatmul.f32.gmra.mxu0 %v385_v51  ;;  %v309_v25 = vand.u32 2147483647, %v1785_v50  ;;  %vm756_vm13 = vweird.f32 %v1792_v32 }
 0x10e   :  { %v1847_v6 = vpop.eup %1181  ;;  %v724_v21 = vsub.f32 1.5, %v723_v1  ;;  %v1850_v2 = vadd.f32 1e-06, %v683_v47  ;;  %v1853_v15 = vsub.f32 %v1581_v27, %v611_v46  ;;  %v744_v48 = vsub.f32 1.5, %v743_v42 }
 0x10f   :  { %v1855_v26 = vpop.eup %1183  ;;  %v1860_v57 = vsub.f32 %v1586_v11, %v607_v24  ;;  %v918_v54 = vadd.f32 %v902_v62, %v447_v36  ;;  %v751_v43 = vmul.f32 %v1847_v6, %v1792_v32  ;;  %v452_v11 = vpop.f32.mrf.mxu0  ;;  %vm310_vm12 = vcmp.eq.f32.partialorder %v309_v25, 8.507059e+37 }
 0x110   :  { %v725_v27 = vmul.f32 %v1797_v13, %v724_v21  ;;  %1185 = vrsqrt.f32 %v1850_v2  ;;  %v643_v17 = vmul.f32 %v1853_v15, %v1853_v15  ;;  %v301_v18 = vmul.f32 %v1855_v26, %v1785_v50 }
 0x111   :  { %v639_v60 = vmul.f32 %v1860_v57, %v1860_v57  ;;  %970 = vmatmul.f32.vlgmr.msra.gmra.mxu2 %v918_v54  ;;  %v752_v38 = vmul.f32 %v1847_v6, %v751_v43  ;;  %vm306_vm9 = vweird.f32 %v1855_v26  ;;  %v745_v61 = vmul.f32 %v1790_v5, %v744_v48 }
 0x112   :  { %v729_v20 = vsel %vm728_vm5, %v1797_v13, %v725_v27  ;;  %v739_v13 = vsel %vm1864_vm4, %v1756_v33, %v735_v63  ;;  %v302_v34 = vsub.f32 1.0, %v301_v18  ;;  %v453_v21 = vadd.f32 %v452_v11, %v1780_v58  ;;  %vm1920_vm11 = vmor %vm305_vm8, %vm306_vm9 }
 0x113   :  { %v871_v36 = vmul.f32 %v729_v20, %v1534_v56  ;;  %664 = vadd.xlane.f32.xlu2 %v639_v60  ;;  %672 = vadd.xlane.f32.xlu0 %v643_v17  ;;  %v659_v59 = vpop.xlane.xlu1 %658  ;;  %v588_v44 = vpop.xlane.xlu0 %587  ;;  %v872_v1 = vmul.f32 %v739_v13, %v1514_v45  ;;  %v753_v45 = vmul.f32 0.5, %v752_v38  ;;  %v521_v27 = vadd.f32 %v520_v0, %v1748_v23 }
 0x114   :  { %v684_v8 = vmul.f32 %v659_v59, %v1505_v28  ;;  %v580_v56 = vpop.xlane.xlu2 %579  ;;  %v612_v31 = vmul.f32 %v1505_v28, %v588_v44  ;;  %v303_v24 = vmul.f32 %v1855_v26, %v302_v34  ;;  %v749_v11 = vsel %vm1910_vm10, %v1790_v5, %v745_v61 }
 0x115   :  { %v903_v53 = vmul.f32 %v887_v7, %v871_v36  ;;  %v608_v10 = vmul.f32 %v1505_v28, %v580_v56  ;;  %v904_v42 = vmul.f32 %v888_v4, %v872_v1  ;;  %v312_v20 = vor.u32 1.1754944e-38, %v311_v41  ;;  %v523_v36 = vpop.f32.mrf.mxu1 }
 0x116   :  { %v1891_v12 = vpop.eup %1185  ;;  %v1895_v33 = vadd.f32 1e-06, %v684_v8  ;;  %v1898_v49 = vsub.f32 %v1598_v37, %v612_v31  ;;  %v304_v43 = vadd.f32 %v1855_v26, %v303_v24  ;;  %v754_v51 = vsub.f32 1.5, %v753_v45 }
 0x117   :  { %v1902_v47 = vsub.f32 %v1603_v40, %v608_v10  ;;  %v919_v3 = vadd.f32 %v903_v53, %v450_v52  ;;  %v761_v40 = vmul.f32 %v1891_v12, %v1850_v2  ;;  %v455_v54 = vpop.f32.mrf.mxu0  ;;  %vm757_vm14 = vweird.f32 %v1847_v6 }
 0x118   :  { %1187 = vrsqrt.f32 %v1895_v33  ;;  %v644_v46 = vmul.f32 %v1898_v49, %v1898_v49  ;;  %v308_v52 = vsel %vm1920_vm11, %v1855_v26, %v304_v43  ;;  %v889_v44 = vadd.f32 1.0, %v521_v27  ;;  %vm1953_vm15 = vmor %vm756_vm13, %vm757_vm14 }
 0x119   :  { %v640_v62 = vmul.f32 %v1902_v47, %v1902_v47  ;;  %973 = vmatmul.f32.gmra.mxu2 %v919_v3  ;;  %v762_v50 = vmul.f32 %v1891_v12, %v761_v40  ;;  %v313_v5 = vsel %vm310_vm12, %v312_v20, %v308_v52  ;;  %v873_v48 = vmul.f32 %v749_v11, %v1531_v55 }
 0x11a   :  { %v920_v13 = vadd.f32 %v904_v42, %v453_v21  ;;  %v386_v26 = vmul.f32 %v313_v5, %v1727_v9  ;;  %v755_v31 = vmul.f32 %v1847_v6, %v754_v51  ;;  %v524_v9 = vadd.f32 %v523_v36, %v1748_v23 }
 0x11b   :  { %666 = vadd.xlane.f32.xlu1 %v640_v62  ;;  %674 = vadd.xlane.f32.xlu2 %v644_v46  ;;  %v590_v7 = vpop.xlane.xlu0 %589  ;;  %v763_v56 = vmul.f32 0.5, %v762_v50  ;;  %v905_v55 = vmul.f32 %v889_v44, %v873_v48  ;;  %vm766_vm0 = vweird.f32 %v1850_v2  ;;  %vm767_vm1 = vweird.f32 %v1891_v12  ;;  %v1975_v50 = vpop.f32.mrf.mxu3 }
 0x11c   :  { %v582_v60 = vpop.xlane.xlu2 %581  ;;  %v613_v17 = vmul.f32 %v1505_v28, %v590_v7  ;;  %543 = vmatmul.f32.gmra.mxu1 %v386_v26  ;;  %478 = vmatmul.f32.gmra.mxu0 %v386_v26  ;;  %v759_v34 = vsel %vm1953_vm15, %v1847_v6, %v755_v31  ;;  %v890_v46 = vadd.f32 1.0, %v524_v9  ;;  %vm768_vm2 = vmor %vm766_vm0, %vm767_vm1  ;;  %vm776_vm3 = vweird.f32 %v1895_v33 }
 0x11d   :  { %v609_v0 = vmul.f32 %v1505_v28, %v582_v60  ;;  %v764_v38 = vsub.f32 1.5, %v763_v56  ;;  %v526_v61 = vpop.f32.mrf.mxu1  ;;  %v874_v3 = vmul.f32 %v759_v34, %v1548_v16 }
 0x11e   :  { %v1188_v4 = vpop.eup %1187  ;;  %v1938_v59 = vsub.f32 %v1610_v22, %v613_v17  ;;  %v527_v6 = vadd.f32 %v526_v61, %v1748_v23 }
 0x11f   :  { %v1943_v18 = vsub.f32 %v1615_v35, %v609_v0  ;;  %v771_v22 = vmul.f32 %v1188_v4, %v1895_v33  ;;  %v456_v35 = vadd.f32 %v455_v54, %v1780_v58  ;;  %v458_v1 = vpop.f32.mrf.mxu0  ;;  %v765_v40 = vmul.f32 %v1891_v12, %v764_v38 }
 0x120   :  { %v645_v8 = vmul.f32 %v1938_v59, %v1938_v59  ;;  %v906_v62 = vmul.f32 %v890_v46, %v874_v3  ;;  %v459_v24 = vadd.f32 %v458_v1, %v1780_v58  ;;  %vm777_vm4 = vweird.f32 %v1188_v4 }
 0x121   :  { %v641_v32 = vmul.f32 %v1943_v18, %v1943_v18  ;;  %976 = vmatmul.f32.gmra.mxu2 %v920_v13  ;;  %v772_v10 = vmul.f32 %v1188_v4, %v771_v22  ;;  %v921_v37 = vadd.f32 %v905_v55, %v456_v35  ;;  %v769_v2 = vsel %vm768_vm2, %v1891_v12, %v765_v40  ;;  %vm778_vm5 = vmor %vm776_vm3, %vm777_vm4 }
 0x122   :  { %v875_v16 = vmul.f32 %v769_v2, %v1572_v14  ;;  %v891_v25 = vadd.f32 1.0, %v527_v6  ;;  %v922_v41 = vadd.f32 %v906_v62, %v459_v24 }
 0x123   :  { %668 = vadd.xlane.f32.xlu0 %v641_v32  ;;  %676 = vadd.xlane.f32.xlu1 %v645_v8  ;;  %v773_v45 = vmul.f32 0.5, %v772_v10  ;;  %v1977_v36 = vpop.f32.mrf.mxu3 }
 0x124   :  { %v907_v54 = vmul.f32 %v891_v25, %v875_v16 }
 0x125   :  { %v774_v21 = vsub.f32 1.5, %v773_v45  ;;  %v529_v42 = vpop.f32.mrf.mxu1 }
 0x126   :  { %v530_v43 = vadd.f32 %v529_v42, %v1748_v23 }
 0x127   :  { %v461_v63 = vpop.f32.mrf.mxu0  ;;  %v775_v27 = vmul.f32 %v1188_v4, %v774_v21 }
 0x128   :  { %v462_v7 = vadd.f32 %v461_v63, %v1780_v58  ;;  %v892_v60 = vadd.f32 1.0, %v530_v43 }
 0x129   :  { %979 = vmatmul.f32.gmra.mxu2 %v921_v37  ;;  %v779_v11 = vsel %vm778_vm5, %v1188_v4, %v775_v27 }
 0x12a   :  { %v876_v12 = vmul.f32 %v779_v11, %v1590_v30  ;;  %v923_v33 = vadd.f32 %v907_v54, %v462_v7 }
 0x12b   :  { %v1979_v0 = vpop.f32.mrf.mxu3 }
 0x12c   :  { %v908_v20 = vmul.f32 %v892_v60, %v876_v12 }
 0x12d   :  { %v532_v44 = vpop.f32.mrf.mxu1 }
 0x12e   :  { %v533_v3 = vadd.f32 %v532_v44, %v1748_v23 }
 0x12f   :  { %v464_v17 = vpop.f32.mrf.mxu0 }
 0x130   :  { %v465_v14 = vadd.f32 %v464_v17, %v1780_v58  ;;  %v893_v2 = vadd.f32 1.0, %v533_v3 }
 0x131   :  { %982 = vmatmul.f32.gmra.mxu2 %v922_v41 }
 0x132   :  { %v924_v51 = vadd.f32 %v908_v20, %v465_v14 }
 0x133   :  { %v1982_v30 = vpop.f32.mrf.mxu3 }
 0x135   :  { %v535_v9 = vpop.f32.mrf.mxu1 }
 0x136   :  { %v536_v12 = vadd.f32 %v535_v9, %v1748_v23 }
 0x137   :  { %v467_v53 = vpop.f32.mrf.mxu0 }
 0x138   :  { %v468_v42 = vadd.f32 %v467_v53, %v1780_v58 }
 0x139   :  { %985 = vmatmul.f32.gmra.mxu2 %v923_v33 }
 0x13b   :  { %v547_v55 = vpop.f32.mrf.mxu3 }
 0x13f   :  { %v470_v27 = vpop.f32.mrf.mxu0 }
 0x141   :  { %988 = vmatmul.f32.gmra.mxu2 %v924_v51  ;;  %v548_v51 = vadd.f32 %v547_v55, %v1748_v23 }
 0x143   :  { %v550_v54 = vpop.f32.mrf.mxu3 }
 0x175   :  { %v661_v52 = vpop.xlane.xlu2 %660 }
 0x176   :  { %v685_v4 = vmul.f32 %v661_v52, %v1505_v28 }
 0x178   :  { %v701_v5 = vadd.f32 1e-06, %v685_v4 }
 0x17a   :  { %1189 = vrsqrt.f32 %v701_v5  ;;  %vm786_vm7 = vweird.f32 %v701_v5 }
 0x17d   :  { %v671_v13 = vpop.xlane.xlu1 %670 }
 0x17e   :  { %v663_v48 = vpop.xlane.xlu0 %662  ;;  %v690_v26 = vmul.f32 %v671_v13, %v1505_v28 }
 0x17f   :  { %v686_v8 = vmul.f32 %v663_v48, %v1505_v28 }
 0x180   :  { %v1190_v56 = vpop.eup %1189  ;;  %v1986_v32 = vadd.f32 1e-06, %v690_v26 }
 0x181   :  { %v702_v22 = vadd.f32 1e-06, %v686_v8  ;;  %v781_v31 = vmul.f32 %v1190_v56, %v701_v5  ;;  %vm787_vm6 = vweird.f32 %v1190_v56 }
 0x182   :  { %vm788_vm8 = vmor %vm786_vm7, %vm787_vm6  ;;  %vm836_vm13 = vweird.f32 %v1986_v32 }
 0x183   :  { %1191 = vrsqrt.f32 %v702_v22  ;;  %v782_v35 = vmul.f32 %v1190_v56, %v781_v31  ;;  %vm796_vm10 = vweird.f32 %v702_v22  ;;  %v2022_v31 = vld [vmem:[%s2186_s5] ss:$0 sm:$0xff] }
 0x184   :  { %1193 = vrsqrt.f32 %v1986_v32 }
 0x185   :  { %v783_v38 = vmul.f32 0.5, %v782_v35 }
 0x186   :  { %v665_v10 = vpop.xlane.xlu2 %664  ;;  %v673_v34 = vpop.xlane.xlu0 %672 }
 0x187   :  { %v687_v1 = vmul.f32 %v665_v10, %v1505_v28  ;;  %v691_v61 = vmul.f32 %v673_v34, %v1505_v28  ;;  %v784_v46 = vsub.f32 1.5, %v783_v38 }
 0x189   :  { %v1192_v37 = vpop.eup %1191  ;;  %v1992_v45 = vadd.f32 1e-06, %v687_v1  ;;  %v1994_v40 = vadd.f32 1e-06, %v691_v61  ;;  %v785_v6 = vmul.f32 %v1190_v56, %v784_v46  ;;  %v483_v61 = vadd.f32 %v1975_v50, %v1780_v58 }
 0x18a   :  { %v1996_v62 = vpop.eup %1193  ;;  %v791_v24 = vmul.f32 %v1192_v37, %v702_v22  ;;  %vm797_vm9 = vweird.f32 %v1192_v37  ;;  %v471_v22 = vadd.f32 %v470_v27, %v1780_v58  ;;  %v898_v46 = vadd.f32 1.0, %v548_v51 }
 0x18b   :  { %v831_v21 = vmul.f32 %v1996_v62, %v1986_v32  ;;  %1195 = vrsqrt.f32 %v1992_v45  ;;  %v789_v16 = vsel %vm788_vm8, %v1190_v56, %v785_v6  ;;  %v894_v56 = vadd.f32 1.0, %v536_v12  ;;  %vm798_vm12 = vmor %vm796_vm10, %vm797_vm9 }
 0x18c   :  { %v792_v63 = vmul.f32 %v1192_v37, %v791_v24  ;;  %1197 = vrsqrt.f32 %v1994_v40  ;;  %v877_v41 = vmul.f32 %v789_v16, %v1761_v39  ;;  %v538_v39 = vpop.f32.mrf.mxu1  ;;  %vm837_vm11 = vweird.f32 %v1996_v62 }
 0x18d   :  { %v832_v25 = vmul.f32 %v1996_v62, %v831_v21  ;;  %v539_v9 = vadd.f32 %v538_v39, %v1748_v23  ;;  %vm838_vm14 = vmor %vm836_vm13, %vm837_vm11  ;;  %vm806_vm1 = vweird.f32 %v1992_v45  ;;  %vm846_vm3 = vweird.f32 %v1994_v40 }
 0x18e   :  { %v793_v7 = vmul.f32 0.5, %v792_v63  ;;  %v667_v43 = vpop.xlane.xlu1 %666  ;;  %v675_v11 = vpop.xlane.xlu2 %674  ;;  %v909_v33 = vmul.f32 %v893_v2, %v877_v41  ;;  %v551_v41 = vadd.f32 %v550_v54, %v1748_v23 }
 0x18f   :  { %v833_v60 = vmul.f32 0.5, %v832_v25  ;;  %v688_v17 = vmul.f32 %v667_v43, %v1505_v28  ;;  %v692_v20 = vmul.f32 %v675_v11, %v1505_v28  ;;  %v473_v63 = vpop.f32.mrf.mxu0  ;;  %v895_v25 = vadd.f32 1.0, %v539_v9 }
 0x190   :  { %v794_v14 = vsub.f32 1.5, %v793_v7  ;;  %v925_v48 = vadd.f32 %v909_v33, %v468_v42  ;;  %v553_v42 = vpop.f32.mrf.mxu3 }
 0x191   :  { %v2009_v52 = vpop.eup %1195  ;;  %v834_v4 = vsub.f32 1.5, %v833_v60  ;;  %v2011_v5 = vadd.f32 1e-06, %v688_v17  ;;  %v2013_v44 = vadd.f32 1e-06, %v692_v20  ;;  %v554_v17 = vadd.f32 %v553_v42, %v1748_v23 }
 0x192   :  { %v2015_v13 = vpop.eup %1197  ;;  %v801_v8 = vmul.f32 %v2009_v52, %v1992_v45  ;;  %v795_v26 = vmul.f32 %v1192_v37, %v794_v14  ;;  %991 = vmatmul.f32.gmra.mxu2 %v925_v48  ;;  %vm807_vm15 = vweird.f32 %v2009_v52 }
 0x193   :  { %v841_v53 = vmul.f32 %v2015_v13, %v1994_v40  ;;  %1199 = vrsqrt.f32 %v2011_v5  ;;  %v835_v34 = vmul.f32 %v1996_v62, %v834_v4  ;;  %vm847_vm0 = vweird.f32 %v2015_v13  ;;  %vm2069_vm2 = vmor %vm806_vm1, %vm807_vm15 }
 0x194   :  { %v802_v55 = vmul.f32 %v2009_v52, %v801_v8  ;;  %1201 = vrsqrt.f32 %v2013_v44  ;;  %v799_v35 = vsel %vm798_vm12, %v1192_v37, %v795_v26  ;;  %v971_v1 = vpop.f32.mrf.mxu2  ;;  %v541_v33 = vpop.f32.mrf.mxu1  ;;  %vm848_vm4 = vmor %vm846_vm3, %vm847_vm0  ;;  %v899_v26 = vadd.f32 1.0, %v551_v41 }
 0x195   :  { %v842_v38 = vmul.f32 %v2015_v13, %v841_v53  ;;  %v878_v10 = vmul.f32 %v799_v35, %v1802_v19  ;;  %v972_v37 = vadd.f32 %v2022_v31, %v971_v1  ;;  %v839_v2 = vsel %vm838_vm14, %v1996_v62, %v835_v34 }
 0x196   :  { %v803_v3 = vmul.f32 0.5, %v802_v55  ;;  %v677_v24 = vpop.xlane.xlu1 %676  ;;  %v669_v6 = vpop.xlane.xlu0 %668  ;;  %v882_v16 = vmul.f32 %v839_v2, %v1795_v29  ;;  %v474_v53 = vadd.f32 %v473_v63, %v1780_v58  ;;  %v542_v35 = vadd.f32 %v541_v33, %v1748_v23 }
 0x197   :  { %v843_v32 = vmul.f32 0.5, %v842_v38  ;;  %v910_v21 = vmul.f32 %v894_v56, %v878_v10  ;;  %v693_v19 = vmul.f32 %v677_v24, %v1505_v28  ;;  %1019 = vst [vmem:[%s2187_s6] sm:$0xff] %v972_v37  ;;  %v689_v50 = vmul.f32 %v669_v6, %v1505_v28 }
 0x198   :  { %v804_v7 = vsub.f32 1.5, %v803_v3  ;;  %v914_v60 = vmul.f32 %v898_v46, %v882_v16  ;;  %v486_v1 = vadd.f32 %v1977_v36, %v1780_v58  ;;  %vm816_vm7 = vweird.f32 %v2011_v5  ;;  %v556_v63 = vpop.f32.mrf.mxu3 }
 0x199   :  { %v2050_v27 = vpop.eup %1199  ;;  %v844_v43 = vsub.f32 1.5, %v843_v32  ;;  %v2052_v62 = vadd.f32 1e-06, %v693_v19  ;;  %v926_v11 = vadd.f32 %v910_v21, %v471_v22  ;;  %v2059_v28 = vadd.f32 1e-06, %v689_v50 }
 0x19a   :  { %v2054_v12 = vpop.eup %1201  ;;  %v811_v29 = vmul.f32 %v2050_v27, %v2011_v5  ;;  %v930_v14 = vadd.f32 %v914_v60, %v483_v61  ;;  %v805_v4 = vmul.f32 %v2009_v52, %v804_v7  ;;  %vm817_vm5 = vweird.f32 %v2050_v27  ;;  %v476_v61 = vpop.f32.mrf.mxu0 }
 0x19b   :  { %v851_v54 = vmul.f32 %v2054_v12, %v2013_v44  ;;  %1203 = vrsqrt.f32 %v2052_v62  ;;  %994 = vmatmul.f32.gmra.mxu2 %v926_v11  ;;  %v845_v48 = vmul.f32 %v2015_v13, %v844_v43  ;;  %vm857_vm6 = vweird.f32 %v2054_v12  ;;  %vm2099_vm8 = vmor %vm816_vm7, %vm817_vm5 }
 0x19c   :  { %v812_v20 = vmul.f32 %v2050_v27, %v811_v29  ;;  %1205 = vrsqrt.f32 %v2059_v28  ;;  %v974_v8 = vpop.f32.mrf.mxu2  ;;  %1006 = vmatmul.f32.vlgmr.msra.gmra.mxu3 %v930_v14  ;;  %v809_v40 = vsel %vm2069_vm2, %v2009_v52, %v805_v4  ;;  %vm856_vm9 = vweird.f32 %v2013_v44  ;;  %v544_v19 = vpop.f32.mrf.mxu1 }
 0x19d   :  { %v852_v39 = vmul.f32 %v2054_v12, %v851_v54  ;;  %v975_v56 = vadd.f32 %v2022_v31, %v974_v8  ;;  %v849_v55 = vsel %vm848_vm4, %v2015_v13, %v845_v48  ;;  %v879_v38 = vmul.f32 %v809_v40, %v1860_v57  ;;  %vm858_vm10 = vmor %vm856_vm9, %vm857_vm6 }
 0x19e   :  { %v813_v45 = vmul.f32 0.5, %v812_v20  ;;  %v883_v10 = vmul.f32 %v849_v55, %v1853_v15  ;;  %v900_v13 = vadd.f32 1.0, %v554_v17  ;;  %v896_v32 = vadd.f32 1.0, %v542_v35 }
 0x19f   :  { %v853_v22 = vmul.f32 0.5, %v852_v39  ;;  %1020 = vst [vmem:[%s2187_s6 + $0x8] sm:$0xff] %v975_v56  ;;  %v911_v46 = vmul.f32 %v895_v25, %v879_v38  ;;  %v477_v41 = vadd.f32 %v476_v61, %v1780_v58  ;;  %v489_v29 = vadd.f32 %v1979_v0, %v1780_v58 }
 0x1a0   :  { %v814_v9 = vsub.f32 1.5, %v813_v45  ;;  %v915_v15 = vmul.f32 %v899_v26, %v883_v10  ;;  %vm866_vm13 = vweird.f32 %v2052_v62  ;;  %vm826_vm15 = vweird.f32 %v2059_v28 }
 0x1a1   :  { %v1204_v34 = vpop.eup %1203  ;;  %v854_v52 = vsub.f32 1.5, %v853_v22  ;;  %v927_v21 = vadd.f32 %v911_v46, %v474_v53 }
 0x1a2   :  { %v1206_v3 = vpop.eup %1205  ;;  %v861_v57 = vmul.f32 %v1204_v34, %v2052_v62  ;;  %v815_v24 = vmul.f32 %v2050_v27, %v814_v9  ;;  %v931_v2 = vadd.f32 %v915_v15, %v486_v1  ;;  %vm867_vm11 = vweird.f32 %v1204_v34  ;;  %v479_v51 = vpop.f32.mrf.mxu0 }
 0x1a3   :  { %v821_v36 = vmul.f32 %v1206_v3, %v2059_v28  ;;  %v855_v6 = vmul.f32 %v2054_v12, %v854_v52  ;;  %997 = vmatmul.f32.gmra.mxu2 %v927_v21  ;;  %vm827_vm12 = vweird.f32 %v1206_v3  ;;  %vm868_vm14 = vmor %vm866_vm13, %vm867_vm11  ;;  %v480_v56 = vadd.f32 %v479_v51, %v1780_v58 }
 0x1a4   :  { %v862_v5 = vmul.f32 %v1204_v34, %v861_v57  ;;  %v819_v50 = vsel %vm2099_vm8, %v2050_v27, %v815_v24  ;;  %v977_v25 = vpop.f32.mrf.mxu2  ;;  %1009 = vmatmul.f32.gmra.mxu3 %v931_v2  ;;  %v545_v27 = vadd.f32 %v544_v19, %v1748_v23  ;;  %vm828_vm0 = vmor %vm826_vm15, %vm827_vm12  ;;  %v492_v28 = vadd.f32 %v1982_v30, %v1780_v58 }
 0x1a5   :  { %v822_v16 = vmul.f32 %v1206_v3, %v821_v36  ;;  %v859_v44 = vsel %vm858_vm10, %v2054_v12, %v855_v6  ;;  %v880_v7 = vmul.f32 %v819_v50, %v1902_v47  ;;  %v978_v11 = vadd.f32 %v2022_v31, %v977_v25 }
 0x1a6   :  { %v863_v42 = vmul.f32 0.5, %v862_v5  ;;  %v884_v43 = vmul.f32 %v859_v44, %v1898_v49  ;;  %v557_v12 = vadd.f32 %v556_v63, %v1748_v23  ;;  %v897_v39 = vadd.f32 1.0, %v545_v27 }
 0x1a7   :  { %v823_v60 = vmul.f32 0.5, %v822_v16  ;;  %v912_v54 = vmul.f32 %v896_v32, %v880_v7  ;;  %1021 = vst [vmem:[%s2187_s6 + $0x10] sm:$0xff] %v978_v11 }
 0x1a8   :  { %v864_v33 = vsub.f32 1.5, %v863_v42  ;;  %v916_v17 = vmul.f32 %v900_v13, %v884_v43  ;;  %v901_v23 = vadd.f32 1.0, %v557_v12 }
 0x1a9   :  { %v824_v49 = vsub.f32 1.5, %v823_v60  ;;  %v928_v20 = vadd.f32 %v912_v54, %v477_v41 }
 0x1aa   :  { %v865_v47 = vmul.f32 %v1204_v34, %v864_v33  ;;  %v932_v0 = vadd.f32 %v916_v17, %v489_v29 }
 0x1ab   :  { %v825_v14 = vmul.f32 %v1206_v3, %v824_v49  ;;  %1000 = vmatmul.f32.gmra.mxu2 %v928_v20 }
 0x1ac   :  { %v869_v4 = vsel %vm868_vm14, %v1204_v34, %v865_v47  ;;  %v980_v45 = vpop.f32.mrf.mxu2  ;;  %1012 = vmatmul.f32.gmra.mxu3 %v932_v0 }
 0x1ad   :  { %v829_v48 = vsel %vm828_vm0, %v1206_v3, %v825_v14  ;;  %v885_v8 = vmul.f32 %v869_v4, %v1938_v59  ;;  %v981_v62 = vadd.f32 %v2022_v31, %v980_v45 }
 0x1ae   :  { %v881_v26 = vmul.f32 %v829_v48, %v1943_v18 }
 0x1af   :  { %v917_v53 = vmul.f32 %v901_v23, %v885_v8  ;;  %1022 = vst [vmem:[%s2187_s6 + $0x18] sm:$0xff] %v981_v62 }
 0x1b0   :  { %v913_v22 = vmul.f32 %v897_v39, %v881_v26 }
 0x1b1   :  { %v933_v59 = vadd.f32 %v917_v53, %v492_v28 }
 0x1b2   :  { %v929_v40 = vadd.f32 %v913_v22, %v480_v56 }
 0x1b4   :  { %v983_v55 = vpop.f32.mrf.mxu2  ;;  %1003 = vmatmul.f32.gmra.mxu2 %v929_v40  ;;  %1015 = vmatmul.f32.gmra.mxu3 %v933_v59 }
 0x1b5   :  { %v984_v18 = vadd.f32 %v2022_v31, %v983_v55 }
 0x1b7   :  { %1023 = vst [vmem:[%s2187_s6 + $0x20] sm:$0xff] %v984_v18 }
 0x1bc   :  { %v986_v35 = vpop.f32.mrf.mxu2 }
 0x1bd   :  { %v987_v9 = vadd.f32 %v2022_v31, %v986_v35 }
 0x1bf   :  { %1024 = vst [vmem:[%s2187_s6 + $0x28] sm:$0xff] %v987_v9 }
 0x1c4   :  { %v989_v58 = vpop.f32.mrf.mxu2 }
 0x1c5   :  { %v990_v30 = vadd.f32 %v2022_v31, %v989_v58 }
 0x1c7   :  { %1025 = vst [vmem:[%s2187_s6 + $0x30] sm:$0xff] %v990_v30 }
 0x215   :  { %v992_v38 = vpop.f32.mrf.mxu2 }
 0x216   :  { %v993_v10 = vadd.f32 %v2022_v31, %v992_v38 }
 0x218   :  { %1026 = vst [vmem:[%s2187_s6 + $0x38] sm:$0xff] %v993_v10 }
 0x21e   :  { %v995_v34 = vpop.f32.mrf.mxu2 }
 0x21f   :  { %v996_v1 = vadd.f32 %v2022_v31, %v995_v34  ;;  %v1007_v52 = vpop.f32.mrf.mxu3 }
 0x220   :  { %v1008_v13 = vadd.f32 %v2022_v31, %v1007_v52 }
 0x221   :  { %1027 = vst [vmem:[%s2187_s6 + $0x40] sm:$0xff] %v996_v1 }
 0x222   :  { %1031 = vst [vmem:[%s2187_s6 + $0x60] sm:$0xff] %v1008_v13 }
 0x226   :  { %v998_v61 = vpop.f32.mrf.mxu2 }
 0x227   :  { %v1010_v3 = vpop.f32.mrf.mxu3  ;;  %v999_v57 = vadd.f32 %v2022_v31, %v998_v61 }
 0x228   :  { %v1011_v46 = vadd.f32 %v2022_v31, %v1010_v3 }
 0x229   :  { %1028 = vst [vmem:[%s2187_s6 + $0x48] sm:$0xff] %v999_v57 }
 0x22a   :  { %1032 = vst [vmem:[%s2187_s6 + $0x68] sm:$0xff] %v1011_v46 }
 0x22e   :  { %v1001_v15 = vpop.f32.mrf.mxu2 }
 0x22f   :  { %v1013_v37 = vpop.f32.mrf.mxu3  ;;  %v1002_v36 = vadd.f32 %v2022_v31, %v1001_v15 }
 0x230   :  { %v1014_v24 = vadd.f32 %v2022_v31, %v1013_v37 }
 0x231   :  { %1029 = vst [vmem:[%s2187_s6 + $0x50] sm:$0xff] %v1002_v36 }
 0x232   :  { %1033 = vst [vmem:[%s2187_s6 + $0x70] sm:$0xff] %v1014_v24 }
 0x237   :  { %v1004_v6 = vpop.f32.mrf.mxu2  ;;  %v1016_v5 = vpop.f32.mrf.mxu3 }
 0x238   :  { %v1005_v32 = vadd.f32 %v2022_v31, %v1004_v6  ;;  %v1017_v21 = vadd.f32 %v2022_v31, %v1016_v5 }
 0x23a   :  { %1030 = vst [vmem:[%s2187_s6 + $0x58] sm:$0xff] %v1005_v32 }
 0x23b   :  { %1034 = vst [vmem:[%s2187_s6 + $0x78] sm:$0xff] %v1017_v21 }
 0x23c   :  { %1039 = vsyncpa [#allocation3], 1 }

</bundles_post_ra>
